<compile_context>
chip_gen: v7x
topology: tpu7x:2x2x1
jax: 0.10.0
libtpu: 0.0.40
codegen_flags: <defaults>
</compile_context>

<pallas_src>
import functools

import jax
import jax.numpy as jnp
from jax.experimental import pallas as pl
from jax.experimental.pallas import tpu as pltpu


def _round_up(n, m):
    return ((n + m - 1) // m) * m


def _cab_kernel(x_ref, w1_ref, b1_ref, w2_ref, b2_ref,
                wd1_ref, bd1_ref, wd2_ref, bd2_ref, mask_ref, alpha_ref,
                out_ref, pbuf, rhs_buf, *, tap_meta, hw, hwp, g, n_masks):
    """One grid step: `bt` images, each fully processed (body + CA + residual).

    pbuf    : (C, HWp) bf16 scratch -- zero-halo padded activation buffer.
    rhs_buf : (n_taps*C, HW) bf16 scratch -- tap-stacked matmul RHS.
    """
    bt = x_ref.shape[0]
    C = x_ref.shape[1]
    inv_hw = 1.0 / hw

    # Zero the halo gaps once per grid step; data-region stores never touch them.
    pbuf[:, :g] = jnp.zeros((C, g), jnp.bfloat16)
    pbuf[:, g + hw:] = jnp.zeros((C, hwp - g - hw), jnp.bfloat16)

    alpha = alpha_ref[0]                                   # PReLU scalar from SMEM

    def conv_stacked(w_ref, b_ref):
        """3x3 'same' conv on the image currently staged in pbuf (zero-halo layout)."""
        xb = pbuf[...]                                     # (C, HWp) bf16, one load
        # Pre-masked sources (horizontal zero-padding), one per nonzero dx.
        srcs = [xb * mask_ref[r:r + 1, :] for r in range(n_masks)]
        for t, (off, mrow) in enumerate(tap_meta):
            src = xb if mrow < 0 else srcs[mrow]
            # Static slice == spatial shift by `off`; halo lanes supply vertical zeros.
            rhs_buf[t * C:(t + 1) * C, :] = src[:, g + off:g + off + hw]
        acc = jnp.dot(w_ref[...], rhs_buf[...],
                      preferred_element_type=jnp.float32)  # (C, HW) f32, K = 9C
        return acc + b_ref[...]                            # bias (C,1) broadcast

    for i in range(bt):
        xi = x_ref[i]                                      # (C, HW) f32

        # ---- body: conv -> PReLU -> conv -------------------------------------
        pbuf[:, g:g + hw] = xi.astype(jnp.bfloat16)        # single cast per conv input
        z = conv_stacked(w1_ref, b1_ref)
        z = jnp.where(z >= 0.0, z, alpha * z)              # PReLU in f32
        pbuf[:, g:g + hw] = z.astype(jnp.bfloat16)
        res = conv_stacked(w2_ref, b2_ref)

        # ---- CALayer: global avg pool + 2 tiny FCs ----------------------------
        pooled = jnp.sum(res, axis=1, keepdims=True) * inv_hw          # (C, 1)
        h = jnp.maximum(
            jnp.dot(wd1_ref[...], pooled, preferred_element_type=jnp.float32)
            + bd1_ref[...], 0.0)                                        # (C//r, 1)
        scale = jax.nn.sigmoid(
            jnp.dot(wd2_ref[...], h, preferred_element_type=jnp.float32)
            + bd2_ref[...])                                             # (C, 1)

        # ---- fused epilogue: CA scale + residual ------------------------------
        out_ref[i] = res * scale + xi


def cab_forward(x_nchw, params, *, kernel_size=3, images_per_step=2):
    """CAB forward. x_nchw: (B, C, H, W) float32. Returns (B, C, H, W) float32."""
    B, C, H, W = x_nchw.shape
    HW = H * W
    ks = kernel_size
    pad = ks // 2
    n_taps = ks * ks
    Cr = params["ca_w1"].shape[0]

    # NCHW -> (B, C, H*W): pure reshape, no HBM transpose.
    x3 = x_nchw.reshape(B, C, HW)

    # Zero-halo geometry: data sits at lane offset G inside a (C, HWp) padded buffer.
    halo = pad * (W + 1)                      # max |tap offset| in flattened coords
    G = _round_up(max(halo, 1), 128)          # lane-aligned data start
    HWp = _round_up(G + HW + halo, 128)

    # Tap-stacked conv weights: (C_out, ks*ks*C_in) bf16, tap-major (ky, kx) blocks.
    def stack_w(w):   # (O, I, ks, ks) -> (O, ks, ks, I) -> (C, n_taps*C)
        return jnp.transpose(w, (0, 2, 3, 1)).reshape(C, n_taps * C).astype(jnp.bfloat16)

    w1 = stack_w(params["conv1_w"])
    w2 = stack_w(params["conv2_w"])
    b1 = params["conv1_b"].reshape(C, 1).astype(jnp.float32)
    b2 = params["conv2_b"].reshape(C, 1).astype(jnp.float32)
    wd1 = params["ca_w1"].reshape(Cr, C).astype(jnp.float32)
    bd1 = params["ca_b1"].reshape(Cr, 1).astype(jnp.float32)
    wd2 = params["ca_w2"].reshape(C, Cr).astype(jnp.float32)
    bd2 = params["ca_b2"].reshape(C, 1).astype(jnp.float32)
    alpha = params["prelu_w"].reshape(1).astype(jnp.float32)

    # Horizontal source column masks (one per nonzero dx), over the padded layout.
    dx_vals = [d for d in range(-pad, pad + 1) if d != 0]
    col = (jnp.arange(HWp, dtype=jnp.int32) - G) % W
    mask_list = []
    for d in dx_vals:
        keep = (col >= d) if d > 0 else (col < W + d)
        mask_list.append(keep.astype(jnp.bfloat16))
    masks = jnp.stack(mask_list)                                   # (n_masks, HWp) bf16
    mask_row = {d: i for i, d in enumerate(dx_vals)}

    # Per-tap metadata: (flattened offset, source-mask row or -1 for dx == 0).
    tap_meta = []
    for ky in range(ks):
        for kx in range(ks):
            dy, dx = ky - pad, kx - pad
            tap_meta.append((dy * W + dx, -1 if dx == 0 else mask_row[dx]))
    tap_meta = tuple(tap_meta)

    bt = images_per_step if (images_per_step and B % images_per_step == 0) else 1

    kernel = functools.partial(_cab_kernel, tap_meta=tap_meta, hw=HW, hwp=HWp,
                               g=G, n_masks=len(dx_vals))

    full = lambda shape: pl.BlockSpec(shape, lambda b, _n=len(shape): (0,) * _n)

    out = pl.pallas_call(
        kernel,
        out_shape=jax.ShapeDtypeStruct((B, C, HW), jnp.float32),
        grid_spec=pltpu.PrefetchScalarGridSpec(
            num_scalar_prefetch=0,
            grid=(B // bt,),
            in_specs=[
                pl.BlockSpec((bt, C, HW), lambda b: (b, 0, 0)),        # x
                full((C, n_taps * C)),                                  # conv1 stacked W
                full((C, 1)),                                           # conv1 bias
                full((C, n_taps * C)),                                  # conv2 stacked W
                full((C, 1)),                                           # conv2 bias
                full((Cr, C)),                                          # CA squeeze W
                full((Cr, 1)),                                          # CA squeeze b
                full((C, Cr)),                                          # CA excite W
                full((C, 1)),                                           # CA excite b
                full((len(dx_vals), HWp)),                              # column masks
                pl.BlockSpec(memory_space=pltpu.MemorySpace.SMEM),      # PReLU alpha
            ],
            out_specs=pl.BlockSpec((bt, C, HW), lambda b: (b, 0, 0)),
            scratch_shapes=[
                pltpu.VMEM((C, HWp), jnp.bfloat16),                     # zero-halo buf
                pltpu.VMEM((n_taps * C, HW), jnp.bfloat16),             # stacked RHS
            ],
        ),
        compiler_params=pltpu.CompilerParams(
            dimension_semantics=("parallel",)),
    )(x3, w1, b1, w2, b2, wd1, bd1, wd2, bd2, masks, alpha)

    return out.reshape(B, C, H, W)


def init_params(key, C, *, kernel_size=3, reduction=4, bias=True):
    Cr = C // reduction
    ks = jax.random.split(key, 8)
    s = 0.05
    zeros = lambda shape: jnp.zeros(shape, jnp.float32)
    return {
        "conv1_w": s * jax.random.normal(ks[0], (C, C, kernel_size, kernel_size), jnp.float32),
        "conv1_b": s * jax.random.normal(ks[1], (C,), jnp.float32) if bias else zeros((C,)),
        "conv2_w": s * jax.random.normal(ks[2], (C, C, kernel_size, kernel_size), jnp.float32),
        "conv2_b": s * jax.random.normal(ks[3], (C,), jnp.float32) if bias else zeros((C,)),
        "ca_w1": s * jax.random.normal(ks[4], (Cr, C, 1, 1), jnp.float32),
        "ca_b1": s * jax.random.normal(ks[5], (Cr,), jnp.float32) if bias else zeros((Cr,)),
        "ca_w2": s * jax.random.normal(ks[6], (C, Cr, 1, 1), jnp.float32),
        "ca_b2": s * jax.random.normal(ks[7], (C,), jnp.float32) if bias else zeros((C,)),
        "prelu_w": jnp.array([0.25], jnp.float32),   # PyTorch PReLU default init
    }


def _reference(x, p):
    """Pure-JAX NCHW reference matching the PyTorch CAB (act = single-param PReLU)."""
    def conv2d(v, w, b):
        ph, pw = w.shape[2] // 2, w.shape[3] // 2
        y = jax.lax.conv_general_dilated(
            v, w, window_strides=(1, 1),
            padding=[(ph, ph), (pw, pw)],
            dimension_numbers=("NCHW", "OIHW", "NCHW"))
        return y + b[None, :, None, None]

    C = x.shape[1]
    Cr = p["ca_w1"].shape[0]
    alpha = p["prelu_w"][0]
    z = conv2d(x, p["conv1_w"], p["conv1_b"])
    z = jnp.where(z >= 0.0, z, alpha * z)
    res = conv2d(z, p["conv2_w"], p["conv2_b"])

    pooled = jnp.mean(res, axis=(2, 3))                               # (B, C)
    h = jnp.maximum(pooled @ p["ca_w1"].reshape(Cr, C).T + p["ca_b1"], 0.0)
    scale = jax.nn.sigmoid(h @ p["ca_w2"].reshape(C, Cr).T + p["ca_b2"])
    return res * scale[:, :, None, None] + x


if __name__ == "__main__":
    key = jax.random.PRNGKey(0)
    k_x, k_p = jax.random.split(key)

    B, C, H, W = 2, 32, 16, 16          # n_feat=32, reduction=4, kernel_size=3
    x = jax.random.normal(k_x, (B, C, H, W), jnp.float32)
    params = init_params(k_p, C, kernel_size=3, reduction=4, bias=True)

    out = cab_forward(x, params, kernel_size=3, images_per_step=2)
    out = jax.block_until_ready(out)

    ref = _reference(x, params)
    assert out.shape == (B, C, H, W)
    max_err = float(jnp.max(jnp.abs(out - ref)))
    # bf16 MXU operands with f32 accumulation -> slightly loosened tolerance.
    assert jnp.allclose(out, ref, atol=5e-2, rtol=5e-2), (
        f"mismatch vs reference (max abs err {max_err})")

    print("KERNEL_OK")
</pallas_src>

<mosaic_0001>
module attributes {stable_mosaic.version = 11 : i64} {
  func.func @_cab_kernel(%arg0: i32, %arg1: memref<2x32x256xf32, #tpu.memory_space<vmem>>, %arg2: memref<32x288xbf16, #tpu.memory_space<vmem>>, %arg3: memref<32x1xf32, #tpu.memory_space<vmem>>, %arg4: memref<32x288xbf16, #tpu.memory_space<vmem>>, %arg5: memref<32x1xf32, #tpu.memory_space<vmem>>, %arg6: memref<8x32xf32, #tpu.memory_space<vmem>>, %arg7: memref<8x1xf32, #tpu.memory_space<vmem>>, %arg8: memref<32x8xf32, #tpu.memory_space<vmem>>, %arg9: memref<32x1xf32, #tpu.memory_space<vmem>>, %arg10: memref<2x512xbf16, #tpu.memory_space<vmem>>, %arg11: memref<1xf32, #tpu.memory_space<smem>>, %arg12: memref<2x32x256xf32, #tpu.memory_space<vmem>>, %arg13: memref<32x512xbf16, #tpu.memory_space<vmem>>, %arg14: memref<288x256xbf16, #tpu.memory_space<vmem>>) attributes {dimension_semantics = [#tpu.dimension_semantics<parallel>], iteration_bounds = array<i64: 1>, scalar_prefetch = 0 : i64, scratch_operands = 2 : i64, tpu.core_type = #tpu.core_type<tc>, window_params = [{transform_indices = @transform_0, window_bounds = array<i64: 2, 32, 256>}, {pipeline_mode = #tpu.pipeline_mode<synchronous>, transform_indices = @transform_1, window_bounds = array<i64: 32, 288>}, {pipeline_mode = #tpu.pipeline_mode<synchronous>, transform_indices = @transform_2, window_bounds = array<i64: 32, 1>}, {pipeline_mode = #tpu.pipeline_mode<synchronous>, transform_indices = @transform_3, window_bounds = array<i64: 32, 288>}, {pipeline_mode = #tpu.pipeline_mode<synchronous>, transform_indices = @transform_4, window_bounds = array<i64: 32, 1>}, {pipeline_mode = #tpu.pipeline_mode<synchronous>, transform_indices = @transform_5, window_bounds = array<i64: 8, 32>}, {pipeline_mode = #tpu.pipeline_mode<synchronous>, transform_indices = @transform_6, window_bounds = array<i64: 8, 1>}, {pipeline_mode = #tpu.pipeline_mode<synchronous>, transform_indices = @transform_7, window_bounds = array<i64: 32, 8>}, {pipeline_mode = #tpu.pipeline_mode<synchronous>, transform_indices = @transform_8, window_bounds = array<i64: 32, 1>}, {pipeline_mode = #tpu.pipeline_mode<synchronous>, transform_indices = @transform_9, window_bounds = array<i64: 2, 512>}, {transform_indices = @transform_10, window_bounds = array<i64: 1>}, {transform_indices = @transform_11, window_bounds = array<i64: 2, 32, 256>}]} {
    %cst = arith.constant 0.000000e+00 : bf16
    %0 = vector.broadcast %cst : bf16 to vector<32x128xbf16>
    %c0 = arith.constant 0 : index
    %c0_0 = arith.constant 0 : index
    %1 = vector.load %arg13[%c0, %c0_0] : memref<32x512xbf16, #tpu.memory_space<vmem>>, vector<32x128xbf16>
    tpu.vector_store %arg13[%c0, %c0_0], %0 {strides = array<i32>} : memref<32x512xbf16, #tpu.memory_space<vmem>>, vector<32x128xbf16>,
    %cst_1 = arith.constant 0.000000e+00 : bf16
    %2 = vector.broadcast %cst_1 : bf16 to vector<32x128xbf16>
    %c0_2 = arith.constant 0 : index
    %c384 = arith.constant 384 : index
    %3 = vector.load %arg13[%c0_2, %c384] : memref<32x512xbf16, #tpu.memory_space<vmem>>, vector<32x128xbf16>
    tpu.vector_store %arg13[%c0_2, %c384], %2 {strides = array<i32>} : memref<32x512xbf16, #tpu.memory_space<vmem>>, vector<32x128xbf16>,
    %c0_3 = arith.constant 0 : index
    %4 = memref.load %arg11[%c0_3] : memref<1xf32, #tpu.memory_space<smem>>
    %c0_4 = arith.constant 0 : index
    %c0_5 = arith.constant 0 : index
    %c0_6 = arith.constant 0 : index
    %5 = vector.load %arg1[%c0_4, %c0_5, %c0_6] : memref<2x32x256xf32, #tpu.memory_space<vmem>>, vector<1x32x256xf32>
    %6 = vector.shape_cast %5 : vector<1x32x256xf32> to vector<32x256xf32>
    %7 = arith.truncf %6 : vector<32x256xf32> to vector<32x256xbf16>
    %c0_7 = arith.constant 0 : index
    %c128 = arith.constant 128 : index
    %8 = vector.load %arg13[%c0_7, %c128] : memref<32x512xbf16, #tpu.memory_space<vmem>>, vector<32x256xbf16>
    tpu.vector_store %arg13[%c0_7, %c128], %7 {strides = array<i32>} : memref<32x512xbf16, #tpu.memory_space<vmem>>, vector<32x256xbf16>,
    %c0_8 = arith.constant 0 : index
    %c0_9 = arith.constant 0 : index
    %9 = vector.load %arg13[%c0_8, %c0_9] : memref<32x512xbf16, #tpu.memory_space<vmem>>, vector<32x512xbf16>
    %c0_10 = arith.constant 0 : index
    %c0_11 = arith.constant 0 : index
    %10 = vector.load %arg10[%c0_10, %c0_11] : memref<2x512xbf16, #tpu.memory_space<vmem>>, vector<1x512xbf16>
    %11 = vector.broadcast %10 : vector<1x512xbf16> to vector<32x512xbf16>
    %12 = arith.mulf %9, %11 : vector<32x512xbf16>
    %c1 = arith.constant 1 : index
    %c0_12 = arith.constant 0 : index
    %13 = vector.load %arg10[%c1, %c0_12] : memref<2x512xbf16, #tpu.memory_space<vmem>>, vector<1x512xbf16>
    %14 = vector.broadcast %13 : vector<1x512xbf16> to vector<32x512xbf16>
    %15 = arith.mulf %9, %14 : vector<32x512xbf16>
    %16 = vector.extract_strided_slice %12 {offsets = [0, 111], sizes = [32, 256], strides = [1, 1]} : vector<32x512xbf16> to vector<32x256xbf16>
    %c0_13 = arith.constant 0 : index
    %c0_14 = arith.constant 0 : index
    %17 = vector.load %arg14[%c0_13, %c0_14] : memref<288x256xbf16, #tpu.memory_space<vmem>>, vector<32x256xbf16>
    tpu.vector_store %arg14[%c0_13, %c0_14], %16 {strides = array<i32>} : memref<288x256xbf16, #tpu.memory_space<vmem>>, vector<32x256xbf16>,
    %18 = vector.extract_strided_slice %9 {offsets = [0, 112], sizes = [32, 256], strides = [1, 1]} : vector<32x512xbf16> to vector<32x256xbf16>
    %c32 = arith.constant 32 : index
    %c0_15 = arith.constant 0 : index
    %19 = vector.load %arg14[%c32, %c0_15] : memref<288x256xbf16, #tpu.memory_space<vmem>>, vector<32x256xbf16>
    tpu.vector_store %arg14[%c32, %c0_15], %18 {strides = array<i32>} : memref<288x256xbf16, #tpu.memory_space<vmem>>, vector<32x256xbf16>,
    %20 = vector.extract_strided_slice %15 {offsets = [0, 113], sizes = [32, 256], strides = [1, 1]} : vector<32x512xbf16> to vector<32x256xbf16>
    %c64 = arith.constant 64 : index
    %c0_16 = arith.constant 0 : index
    %21 = vector.load %arg14[%c64, %c0_16] : memref<288x256xbf16, #tpu.memory_space<vmem>>, vector<32x256xbf16>
    tpu.vector_store %arg14[%c64, %c0_16], %20 {strides = array<i32>} : memref<288x256xbf16, #tpu.memory_space<vmem>>, vector<32x256xbf16>,
    %22 = vector.extract_strided_slice %12 {offsets = [0, 127], sizes = [32, 256], strides = [1, 1]} : vector<32x512xbf16> to vector<32x256xbf16>
    %c96 = arith.constant 96 : index
    %c0_17 = arith.constant 0 : index
    %23 = vector.load %arg14[%c96, %c0_17] : memref<288x256xbf16, #tpu.memory_space<vmem>>, vector<32x256xbf16>
    tpu.vector_store %arg14[%c96, %c0_17], %22 {strides = array<i32>} : memref<288x256xbf16, #tpu.memory_space<vmem>>, vector<32x256xbf16>,
    %24 = vector.extract_strided_slice %9 {offsets = [0, 128], sizes = [32, 256], strides = [1, 1]} : vector<32x512xbf16> to vector<32x256xbf16>
    %c128_18 = arith.constant 128 : index
    %c0_19 = arith.constant 0 : index
    %25 = vector.load %arg14[%c128_18, %c0_19] : memref<288x256xbf16, #tpu.memory_space<vmem>>, vector<32x256xbf16>
    tpu.vector_store %arg14[%c128_18, %c0_19], %24 {strides = array<i32>} : memref<288x256xbf16, #tpu.memory_space<vmem>>, vector<32x256xbf16>,
    %26 = vector.extract_strided_slice %15 {offsets = [0, 129], sizes = [32, 256], strides = [1, 1]} : vector<32x512xbf16> to vector<32x256xbf16>
    %c160 = arith.constant 160 : index
    %c0_20 = arith.constant 0 : index
    %27 = vector.load %arg14[%c160, %c0_20] : memref<288x256xbf16, #tpu.memory_space<vmem>>, vector<32x256xbf16>
    tpu.vector_store %arg14[%c160, %c0_20], %26 {strides = array<i32>} : memref<288x256xbf16, #tpu.memory_space<vmem>>, vector<32x256xbf16>,
    %28 = vector.extract_strided_slice %12 {offsets = [0, 143], sizes = [32, 256], strides = [1, 1]} : vector<32x512xbf16> to vector<32x256xbf16>
    %c192 = arith.constant 192 : index
    %c0_21 = arith.constant 0 : index
    %29 = vector.load %arg14[%c192, %c0_21] : memref<288x256xbf16, #tpu.memory_space<vmem>>, vector<32x256xbf16>
    tpu.vector_store %arg14[%c192, %c0_21], %28 {strides = array<i32>} : memref<288x256xbf16, #tpu.memory_space<vmem>>, vector<32x256xbf16>,
    %30 = vector.extract_strided_slice %9 {offsets = [0, 144], sizes = [32, 256], strides = [1, 1]} : vector<32x512xbf16> to vector<32x256xbf16>
    %c224 = arith.constant 224 : index
    %c0_22 = arith.constant 0 : index
    %31 = vector.load %arg14[%c224, %c0_22] : memref<288x256xbf16, #tpu.memory_space<vmem>>, vector<32x256xbf16>
    tpu.vector_store %arg14[%c224, %c0_22], %30 {strides = array<i32>} : memref<288x256xbf16, #tpu.memory_space<vmem>>, vector<32x256xbf16>,
    %32 = vector.extract_strided_slice %15 {offsets = [0, 145], sizes = [32, 256], strides = [1, 1]} : vector<32x512xbf16> to vector<32x256xbf16>
    %c256 = arith.constant 256 : index
    %c0_23 = arith.constant 0 : index
    %33 = vector.load %arg14[%c256, %c0_23] : memref<288x256xbf16, #tpu.memory_space<vmem>>, vector<32x256xbf16>
    tpu.vector_store %arg14[%c256, %c0_23], %32 {strides = array<i32>} : memref<288x256xbf16, #tpu.memory_space<vmem>>, vector<32x256xbf16>,
    %c0_24 = arith.constant 0 : index
    %c0_25 = arith.constant 0 : index
    %34 = vector.load %arg2[%c0_24, %c0_25] : memref<32x288xbf16, #tpu.memory_space<vmem>>, vector<32x288xbf16>
    %c0_26 = arith.constant 0 : index
    %c0_27 = arith.constant 0 : index
    %35 = vector.load %arg14[%c0_26, %c0_27] : memref<288x256xbf16, #tpu.memory_space<vmem>>, vector<288x256xbf16>
    %cst_28 = arith.constant dense<0.000000e+00> : vector<32x256xf32>
    %36 = tpu.matmul %34, %35, %cst_28 {dimension_numbers = #tpu.dot_dimension_numbers<[1], [0], [0], [1], [0, 0, 1, 1], [], []>} : vector<32x288xbf16>, vector<288x256xbf16>, vector<32x256xf32> -> vector<32x256xf32>
    %c0_29 = arith.constant 0 : index
    %c0_30 = arith.constant 0 : index
    %37 = vector.load %arg3[%c0_29, %c0_30] : memref<32x1xf32, #tpu.memory_space<vmem>>, vector<32x1xf32>
    %38 = vector.broadcast %37 : vector<32x1xf32> to vector<32x256xf32>
    %39 = arith.addf %36, %38 : vector<32x256xf32>
    %cst_31 = arith.constant 0.000000e+00 : f32
    %40 = vector.broadcast %cst_31 : f32 to vector<32x256xf32>
    %41 = arith.cmpf oge, %39, %40 : vector<32x256xf32>
    %42 = vector.broadcast %4 : f32 to vector<32x256xf32>
    %43 = arith.mulf %42, %39 : vector<32x256xf32>
    %44 = arith.select %41, %39, %43 : vector<32x256xi1>, vector<32x256xf32>
    %45 = arith.truncf %44 : vector<32x256xf32> to vector<32x256xbf16>
    %c0_32 = arith.constant 0 : index
    %c128_33 = arith.constant 128 : index
    %46 = vector.load %arg13[%c0_32, %c128_33] : memref<32x512xbf16, #tpu.memory_space<vmem>>, vector<32x256xbf16>
    tpu.vector_store %arg13[%c0_32, %c128_33], %45 {strides = array<i32>} : memref<32x512xbf16, #tpu.memory_space<vmem>>, vector<32x256xbf16>,
    %c0_34 = arith.constant 0 : index
    %c0_35 = arith.constant 0 : index
    %47 = vector.load %arg13[%c0_34, %c0_35] : memref<32x512xbf16, #tpu.memory_space<vmem>>, vector<32x512xbf16>
    %c0_36 = arith.constant 0 : index
    %c0_37 = arith.constant 0 : index
    %48 = vector.load %arg10[%c0_36, %c0_37] : memref<2x512xbf16, #tpu.memory_space<vmem>>, vector<1x512xbf16>
    %49 = vector.broadcast %48 : vector<1x512xbf16> to vector<32x512xbf16>
    %50 = arith.mulf %47, %49 : vector<32x512xbf16>
    %c1_38 = arith.constant 1 : index
    %c0_39 = arith.constant 0 : index
    %51 = vector.load %arg10[%c1_38, %c0_39] : memref<2x512xbf16, #tpu.memory_space<vmem>>, vector<1x512xbf16>
    %52 = vector.broadcast %51 : vector<1x512xbf16> to vector<32x512xbf16>
    %53 = arith.mulf %47, %52 : vector<32x512xbf16>
    %54 = vector.extract_strided_slice %50 {offsets = [0, 111], sizes = [32, 256], strides = [1, 1]} : vector<32x512xbf16> to vector<32x256xbf16>
    %c0_40 = arith.constant 0 : index
    %c0_41 = arith.constant 0 : index
    %55 = vector.load %arg14[%c0_40, %c0_41] : memref<288x256xbf16, #tpu.memory_space<vmem>>, vector<32x256xbf16>
    tpu.vector_store %arg14[%c0_40, %c0_41], %54 {strides = array<i32>} : memref<288x256xbf16, #tpu.memory_space<vmem>>, vector<32x256xbf16>,
    %56 = vector.extract_strided_slice %47 {offsets = [0, 112], sizes = [32, 256], strides = [1, 1]} : vector<32x512xbf16> to vector<32x256xbf16>
    %c32_42 = arith.constant 32 : index
    %c0_43 = arith.constant 0 : index
    %57 = vector.load %arg14[%c32_42, %c0_43] : memref<288x256xbf16, #tpu.memory_space<vmem>>, vector<32x256xbf16>
    tpu.vector_store %arg14[%c32_42, %c0_43], %56 {strides = array<i32>} : memref<288x256xbf16, #tpu.memory_space<vmem>>, vector<32x256xbf16>,
    %58 = vector.extract_strided_slice %53 {offsets = [0, 113], sizes = [32, 256], strides = [1, 1]} : vector<32x512xbf16> to vector<32x256xbf16>
    %c64_44 = arith.constant 64 : index
    %c0_45 = arith.constant 0 : index
    %59 = vector.load %arg14[%c64_44, %c0_45] : memref<288x256xbf16, #tpu.memory_space<vmem>>, vector<32x256xbf16>
    tpu.vector_store %arg14[%c64_44, %c0_45], %58 {strides = array<i32>} : memref<288x256xbf16, #tpu.memory_space<vmem>>, vector<32x256xbf16>,
    %60 = vector.extract_strided_slice %50 {offsets = [0, 127], sizes = [32, 256], strides = [1, 1]} : vector<32x512xbf16> to vector<32x256xbf16>
    %c96_46 = arith.constant 96 : index
    %c0_47 = arith.constant 0 : index
    %61 = vector.load %arg14[%c96_46, %c0_47] : memref<288x256xbf16, #tpu.memory_space<vmem>>, vector<32x256xbf16>
    tpu.vector_store %arg14[%c96_46, %c0_47], %60 {strides = array<i32>} : memref<288x256xbf16, #tpu.memory_space<vmem>>, vector<32x256xbf16>,
    %62 = vector.extract_strided_slice %47 {offsets = [0, 128], sizes = [32, 256], strides = [1, 1]} : vector<32x512xbf16> to vector<32x256xbf16>
    %c128_48 = arith.constant 128 : index
    %c0_49 = arith.constant 0 : index
    %63 = vector.load %arg14[%c128_48, %c0_49] : memref<288x256xbf16, #tpu.memory_space<vmem>>, vector<32x256xbf16>
    tpu.vector_store %arg14[%c128_48, %c0_49], %62 {strides = array<i32>} : memref<288x256xbf16, #tpu.memory_space<vmem>>, vector<32x256xbf16>,
    %64 = vector.extract_strided_slice %53 {offsets = [0, 129], sizes = [32, 256], strides = [1, 1]} : vector<32x512xbf16> to vector<32x256xbf16>
    %c160_50 = arith.constant 160 : index
    %c0_51 = arith.constant 0 : index
    %65 = vector.load %arg14[%c160_50, %c0_51] : memref<288x256xbf16, #tpu.memory_space<vmem>>, vector<32x256xbf16>
    tpu.vector_store %arg14[%c160_50, %c0_51], %64 {strides = array<i32>} : memref<288x256xbf16, #tpu.memory_space<vmem>>, vector<32x256xbf16>,
    %66 = vector.extract_strided_slice %50 {offsets = [0, 143], sizes = [32, 256], strides = [1, 1]} : vector<32x512xbf16> to vector<32x256xbf16>
    %c192_52 = arith.constant 192 : index
    %c0_53 = arith.constant 0 : index
    %67 = vector.load %arg14[%c192_52, %c0_53] : memref<288x256xbf16, #tpu.memory_space<vmem>>, vector<32x256xbf16>
    tpu.vector_store %arg14[%c192_52, %c0_53], %66 {strides = array<i32>} : memref<288x256xbf16, #tpu.memory_space<vmem>>, vector<32x256xbf16>,
    %68 = vector.extract_strided_slice %47 {offsets = [0, 144], sizes = [32, 256], strides = [1, 1]} : vector<32x512xbf16> to vector<32x256xbf16>
    %c224_54 = arith.constant 224 : index
    %c0_55 = arith.constant 0 : index
    %69 = vector.load %arg14[%c224_54, %c0_55] : memref<288x256xbf16, #tpu.memory_space<vmem>>, vector<32x256xbf16>
    tpu.vector_store %arg14[%c224_54, %c0_55], %68 {strides = array<i32>} : memref<288x256xbf16, #tpu.memory_space<vmem>>, vector<32x256xbf16>,
    %70 = vector.extract_strided_slice %53 {offsets = [0, 145], sizes = [32, 256], strides = [1, 1]} : vector<32x512xbf16> to vector<32x256xbf16>
    %c256_56 = arith.constant 256 : index
    %c0_57 = arith.constant 0 : index
    %71 = vector.load %arg14[%c256_56, %c0_57] : memref<288x256xbf16, #tpu.memory_space<vmem>>, vector<32x256xbf16>
    tpu.vector_store %arg14[%c256_56, %c0_57], %70 {strides = array<i32>} : memref<288x256xbf16, #tpu.memory_space<vmem>>, vector<32x256xbf16>,
    %c0_58 = arith.constant 0 : index
    %c0_59 = arith.constant 0 : index
    %72 = vector.load %arg4[%c0_58, %c0_59] : memref<32x288xbf16, #tpu.memory_space<vmem>>, vector<32x288xbf16>
    %c0_60 = arith.constant 0 : index
    %c0_61 = arith.constant 0 : index
    %73 = vector.load %arg14[%c0_60, %c0_61] : memref<288x256xbf16, #tpu.memory_space<vmem>>, vector<288x256xbf16>
    %cst_62 = arith.constant dense<0.000000e+00> : vector<32x256xf32>
    %74 = tpu.matmul %72, %73, %cst_62 {dimension_numbers = #tpu.dot_dimension_numbers<[1], [0], [0], [1], [0, 0, 1, 1], [], []>} : vector<32x288xbf16>, vector<288x256xbf16>, vector<32x256xf32> -> vector<32x256xf32>
    %c0_63 = arith.constant 0 : index
    %c0_64 = arith.constant 0 : index
    %75 = vector.load %arg5[%c0_63, %c0_64] : memref<32x1xf32, #tpu.memory_space<vmem>>, vector<32x1xf32>
    %76 = vector.broadcast %75 : vector<32x1xf32> to vector<32x256xf32>
    %77 = arith.addf %74, %76 : vector<32x256xf32>
    %cst_65 = arith.constant dense<0.000000e+00> : vector<32xf32>
    %78 = vector.multi_reduction <add>, %77, %cst_65 [1] : vector<32x256xf32> to vector<32xf32>
    %79 = vector.shape_cast %78 : vector<32xf32> to vector<32x1xf32>
    %cst_66 = arith.constant 3.906250e-03 : f32
    %80 = vector.broadcast %cst_66 : f32 to vector<32x1xf32>
    %81 = arith.mulf %79, %80 : vector<32x1xf32>
    %c0_67 = arith.constant 0 : index
    %c0_68 = arith.constant 0 : index
    %82 = vector.load %arg6[%c0_67, %c0_68] : memref<8x32xf32, #tpu.memory_space<vmem>>, vector<8x32xf32>
    %cst_69 = arith.constant dense<0.000000e+00> : vector<8x1xf32>
    %83 = tpu.matmul %82, %81, %cst_69 {dimension_numbers = #tpu.dot_dimension_numbers<[1], [0], [0], [1], [0, 0, 1, 1], [], []>} : vector<8x32xf32>, vector<32x1xf32>, vector<8x1xf32> -> vector<8x1xf32>
    %c0_70 = arith.constant 0 : index
    %c0_71 = arith.constant 0 : index
    %84 = vector.load %arg7[%c0_70, %c0_71] : memref<8x1xf32, #tpu.memory_space<vmem>>, vector<8x1xf32>
    %85 = arith.addf %83, %84 : vector<8x1xf32>
    %cst_72 = arith.constant 0.000000e+00 : f32
    %86 = vector.broadcast %cst_72 : f32 to vector<8x1xf32>
    %87 = arith.maximumf %85, %86 : vector<8x1xf32>
    %c0_73 = arith.constant 0 : index
    %c0_74 = arith.constant 0 : index
    %88 = vector.load %arg8[%c0_73, %c0_74] : memref<32x8xf32, #tpu.memory_space<vmem>>, vector<32x8xf32>
    %cst_75 = arith.constant dense<0.000000e+00> : vector<32x1xf32>
    %89 = tpu.matmul %88, %87, %cst_75 {dimension_numbers = #tpu.dot_dimension_numbers<[1], [0], [0], [1], [0, 0, 1, 1], [], []>} : vector<32x8xf32>, vector<8x1xf32>, vector<32x1xf32> -> vector<32x1xf32>
    %c0_76 = arith.constant 0 : index
    %c0_77 = arith.constant 0 : index
    %90 = vector.load %arg9[%c0_76, %c0_77] : memref<32x1xf32, #tpu.memory_space<vmem>>, vector<32x1xf32>
    %91 = arith.addf %89, %90 : vector<32x1xf32>
    %92 = arith.negf %91 : vector<32x1xf32>
    %93 = math.exp %92 : vector<32x1xf32>
    %cst_78 = arith.constant 1.000000e+00 : f32
    %94 = vector.broadcast %cst_78 : f32 to vector<32x1xf32>
    %95 = arith.addf %94, %93 : vector<32x1xf32>
    %96 = arith.divf %94, %95 : vector<32x1xf32>
    %97 = vector.broadcast %96 : vector<32x1xf32> to vector<32x256xf32>
    %98 = arith.mulf %77, %97 : vector<32x256xf32>
    %99 = arith.addf %98, %6 : vector<32x256xf32>
    %c0_79 = arith.constant 0 : index
    %c0_80 = arith.constant 0 : index
    %c0_81 = arith.constant 0 : index
    %100 = vector.load %arg12[%c0_79, %c0_80, %c0_81] : memref<2x32x256xf32, #tpu.memory_space<vmem>>, vector<1x32x256xf32>
    %101 = vector.shape_cast %100 : vector<1x32x256xf32> to vector<32x256xf32>
    %102 = vector.shape_cast %99 : vector<32x256xf32> to vector<1x32x256xf32>
    tpu.vector_store %arg12[%c0_79, %c0_80, %c0_81], %102 {strides = array<i32>} : memref<2x32x256xf32, #tpu.memory_space<vmem>>, vector<1x32x256xf32>,
    %c1_82 = arith.constant 1 : index
    %c0_83 = arith.constant 0 : index
    %c0_84 = arith.constant 0 : index
    %103 = vector.load %arg1[%c1_82, %c0_83, %c0_84] : memref<2x32x256xf32, #tpu.memory_space<vmem>>, vector<1x32x256xf32>
    %104 = vector.shape_cast %103 : vector<1x32x256xf32> to vector<32x256xf32>
    %105 = arith.truncf %104 : vector<32x256xf32> to vector<32x256xbf16>
    %c0_85 = arith.constant 0 : index
    %c128_86 = arith.constant 128 : index
    %106 = vector.load %arg13[%c0_85, %c128_86] : memref<32x512xbf16, #tpu.memory_space<vmem>>, vector<32x256xbf16>
    tpu.vector_store %arg13[%c0_85, %c128_86], %105 {strides = array<i32>} : memref<32x512xbf16, #tpu.memory_space<vmem>>, vector<32x256xbf16>,
    %c0_87 = arith.constant 0 : index
    %c0_88 = arith.constant 0 : index
    %107 = vector.load %arg13[%c0_87, %c0_88] : memref<32x512xbf16, #tpu.memory_space<vmem>>, vector<32x512xbf16>
    %c0_89 = arith.constant 0 : index
    %c0_90 = arith.constant 0 : index
    %108 = vector.load %arg10[%c0_89, %c0_90] : memref<2x512xbf16, #tpu.memory_space<vmem>>, vector<1x512xbf16>
    %109 = vector.broadcast %108 : vector<1x512xbf16> to vector<32x512xbf16>
    %110 = arith.mulf %107, %109 : vector<32x512xbf16>
    %c1_91 = arith.constant 1 : index
    %c0_92 = arith.constant 0 : index
    %111 = vector.load %arg10[%c1_91, %c0_92] : memref<2x512xbf16, #tpu.memory_space<vmem>>, vector<1x512xbf16>
    %112 = vector.broadcast %111 : vector<1x512xbf16> to vector<32x512xbf16>
    %113 = arith.mulf %107, %112 : vector<32x512xbf16>
    %114 = vector.extract_strided_slice %110 {offsets = [0, 111], sizes = [32, 256], strides = [1, 1]} : vector<32x512xbf16> to vector<32x256xbf16>
    %c0_93 = arith.constant 0 : index
    %c0_94 = arith.constant 0 : index
    %115 = vector.load %arg14[%c0_93, %c0_94] : memref<288x256xbf16, #tpu.memory_space<vmem>>, vector<32x256xbf16>
    tpu.vector_store %arg14[%c0_93, %c0_94], %114 {strides = array<i32>} : memref<288x256xbf16, #tpu.memory_space<vmem>>, vector<32x256xbf16>,
    %116 = vector.extract_strided_slice %107 {offsets = [0, 112], sizes = [32, 256], strides = [1, 1]} : vector<32x512xbf16> to vector<32x256xbf16>
    %c32_95 = arith.constant 32 : index
    %c0_96 = arith.constant 0 : index
    %117 = vector.load %arg14[%c32_95, %c0_96] : memref<288x256xbf16, #tpu.memory_space<vmem>>, vector<32x256xbf16>
    tpu.vector_store %arg14[%c32_95, %c0_96], %116 {strides = array<i32>} : memref<288x256xbf16, #tpu.memory_space<vmem>>, vector<32x256xbf16>,
    %118 = vector.extract_strided_slice %113 {offsets = [0, 113], sizes = [32, 256], strides = [1, 1]} : vector<32x512xbf16> to vector<32x256xbf16>
    %c64_97 = arith.constant 64 : index
    %c0_98 = arith.constant 0 : index
    %119 = vector.load %arg14[%c64_97, %c0_98] : memref<288x256xbf16, #tpu.memory_space<vmem>>, vector<32x256xbf16>
    tpu.vector_store %arg14[%c64_97, %c0_98], %118 {strides = array<i32>} : memref<288x256xbf16, #tpu.memory_space<vmem>>, vector<32x256xbf16>,
    %120 = vector.extract_strided_slice %110 {offsets = [0, 127], sizes = [32, 256], strides = [1, 1]} : vector<32x512xbf16> to vector<32x256xbf16>
    %c96_99 = arith.constant 96 : index
    %c0_100 = arith.constant 0 : index
    %121 = vector.load %arg14[%c96_99, %c0_100] : memref<288x256xbf16, #tpu.memory_space<vmem>>, vector<32x256xbf16>
    tpu.vector_store %arg14[%c96_99, %c0_100], %120 {strides = array<i32>} : memref<288x256xbf16, #tpu.memory_space<vmem>>, vector<32x256xbf16>,
    %122 = vector.extract_strided_slice %107 {offsets = [0, 128], sizes = [32, 256], strides = [1, 1]} : vector<32x512xbf16> to vector<32x256xbf16>
    %c128_101 = arith.constant 128 : index
    %c0_102 = arith.constant 0 : index
    %123 = vector.load %arg14[%c128_101, %c0_102] : memref<288x256xbf16, #tpu.memory_space<vmem>>, vector<32x256xbf16>
    tpu.vector_store %arg14[%c128_101, %c0_102], %122 {strides = array<i32>} : memref<288x256xbf16, #tpu.memory_space<vmem>>, vector<32x256xbf16>,
    %124 = vector.extract_strided_slice %113 {offsets = [0, 129], sizes = [32, 256], strides = [1, 1]} : vector<32x512xbf16> to vector<32x256xbf16>
    %c160_103 = arith.constant 160 : index
    %c0_104 = arith.constant 0 : index
    %125 = vector.load %arg14[%c160_103, %c0_104] : memref<288x256xbf16, #tpu.memory_space<vmem>>, vector<32x256xbf16>
    tpu.vector_store %arg14[%c160_103, %c0_104], %124 {strides = array<i32>} : memref<288x256xbf16, #tpu.memory_space<vmem>>, vector<32x256xbf16>,
    %126 = vector.extract_strided_slice %110 {offsets = [0, 143], sizes = [32, 256], strides = [1, 1]} : vector<32x512xbf16> to vector<32x256xbf16>
    %c192_105 = arith.constant 192 : index
    %c0_106 = arith.constant 0 : index
    %127 = vector.load %arg14[%c192_105, %c0_106] : memref<288x256xbf16, #tpu.memory_space<vmem>>, vector<32x256xbf16>
    tpu.vector_store %arg14[%c192_105, %c0_106], %126 {strides = array<i32>} : memref<288x256xbf16, #tpu.memory_space<vmem>>, vector<32x256xbf16>,
    %128 = vector.extract_strided_slice %107 {offsets = [0, 144], sizes = [32, 256], strides = [1, 1]} : vector<32x512xbf16> to vector<32x256xbf16>
    %c224_107 = arith.constant 224 : index
    %c0_108 = arith.constant 0 : index
    %129 = vector.load %arg14[%c224_107, %c0_108] : memref<288x256xbf16, #tpu.memory_space<vmem>>, vector<32x256xbf16>
    tpu.vector_store %arg14[%c224_107, %c0_108], %128 {strides = array<i32>} : memref<288x256xbf16, #tpu.memory_space<vmem>>, vector<32x256xbf16>,
    %130 = vector.extract_strided_slice %113 {offsets = [0, 145], sizes = [32, 256], strides = [1, 1]} : vector<32x512xbf16> to vector<32x256xbf16>
    %c256_109 = arith.constant 256 : index
    %c0_110 = arith.constant 0 : index
    %131 = vector.load %arg14[%c256_109, %c0_110] : memref<288x256xbf16, #tpu.memory_space<vmem>>, vector<32x256xbf16>
    tpu.vector_store %arg14[%c256_109, %c0_110], %130 {strides = array<i32>} : memref<288x256xbf16, #tpu.memory_space<vmem>>, vector<32x256xbf16>,
    %c0_111 = arith.constant 0 : index
    %c0_112 = arith.constant 0 : index
    %132 = vector.load %arg2[%c0_111, %c0_112] : memref<32x288xbf16, #tpu.memory_space<vmem>>, vector<32x288xbf16>
    %c0_113 = arith.constant 0 : index
    %c0_114 = arith.constant 0 : index
    %133 = vector.load %arg14[%c0_113, %c0_114] : memref<288x256xbf16, #tpu.memory_space<vmem>>, vector<288x256xbf16>
    %cst_115 = arith.constant dense<0.000000e+00> : vector<32x256xf32>
    %134 = tpu.matmul %132, %133, %cst_115 {dimension_numbers = #tpu.dot_dimension_numbers<[1], [0], [0], [1], [0, 0, 1, 1], [], []>} : vector<32x288xbf16>, vector<288x256xbf16>, vector<32x256xf32> -> vector<32x256xf32>
    %c0_116 = arith.constant 0 : index
    %c0_117 = arith.constant 0 : index
    %135 = vector.load %arg3[%c0_116, %c0_117] : memref<32x1xf32, #tpu.memory_space<vmem>>, vector<32x1xf32>
    %136 = vector.broadcast %135 : vector<32x1xf32> to vector<32x256xf32>
    %137 = arith.addf %134, %136 : vector<32x256xf32>
    %cst_118 = arith.constant 0.000000e+00 : f32
    %138 = vector.broadcast %cst_118 : f32 to vector<32x256xf32>
    %139 = arith.cmpf oge, %137, %138 : vector<32x256xf32>
    %140 = vector.broadcast %4 : f32 to vector<32x256xf32>
    %141 = arith.mulf %140, %137 : vector<32x256xf32>
    %142 = arith.select %139, %137, %141 : vector<32x256xi1>, vector<32x256xf32>
    %143 = arith.truncf %142 : vector<32x256xf32> to vector<32x256xbf16>
    %c0_119 = arith.constant 0 : index
    %c128_120 = arith.constant 128 : index
    %144 = vector.load %arg13[%c0_119, %c128_120] : memref<32x512xbf16, #tpu.memory_space<vmem>>, vector<32x256xbf16>
    tpu.vector_store %arg13[%c0_119, %c128_120], %143 {strides = array<i32>} : memref<32x512xbf16, #tpu.memory_space<vmem>>, vector<32x256xbf16>,
    %c0_121 = arith.constant 0 : index
    %c0_122 = arith.constant 0 : index
    %145 = vector.load %arg13[%c0_121, %c0_122] : memref<32x512xbf16, #tpu.memory_space<vmem>>, vector<32x512xbf16>
    %c0_123 = arith.constant 0 : index
    %c0_124 = arith.constant 0 : index
    %146 = vector.load %arg10[%c0_123, %c0_124] : memref<2x512xbf16, #tpu.memory_space<vmem>>, vector<1x512xbf16>
    %147 = vector.broadcast %146 : vector<1x512xbf16> to vector<32x512xbf16>
    %148 = arith.mulf %145, %147 : vector<32x512xbf16>
    %c1_125 = arith.constant 1 : index
    %c0_126 = arith.constant 0 : index
    %149 = vector.load %arg10[%c1_125, %c0_126] : memref<2x512xbf16, #tpu.memory_space<vmem>>, vector<1x512xbf16>
    %150 = vector.broadcast %149 : vector<1x512xbf16> to vector<32x512xbf16>
    %151 = arith.mulf %145, %150 : vector<32x512xbf16>
    %152 = vector.extract_strided_slice %148 {offsets = [0, 111], sizes = [32, 256], strides = [1, 1]} : vector<32x512xbf16> to vector<32x256xbf16>
    %c0_127 = arith.constant 0 : index
    %c0_128 = arith.constant 0 : index
    %153 = vector.load %arg14[%c0_127, %c0_128] : memref<288x256xbf16, #tpu.memory_space<vmem>>, vector<32x256xbf16>
    tpu.vector_store %arg14[%c0_127, %c0_128], %152 {strides = array<i32>} : memref<288x256xbf16, #tpu.memory_space<vmem>>, vector<32x256xbf16>,
    %154 = vector.extract_strided_slice %145 {offsets = [0, 112], sizes = [32, 256], strides = [1, 1]} : vector<32x512xbf16> to vector<32x256xbf16>
    %c32_129 = arith.constant 32 : index
    %c0_130 = arith.constant 0 : index
    %155 = vector.load %arg14[%c32_129, %c0_130] : memref<288x256xbf16, #tpu.memory_space<vmem>>, vector<32x256xbf16>
    tpu.vector_store %arg14[%c32_129, %c0_130], %154 {strides = array<i32>} : memref<288x256xbf16, #tpu.memory_space<vmem>>, vector<32x256xbf16>,
    %156 = vector.extract_strided_slice %151 {offsets = [0, 113], sizes = [32, 256], strides = [1, 1]} : vector<32x512xbf16> to vector<32x256xbf16>
    %c64_131 = arith.constant 64 : index
    %c0_132 = arith.constant 0 : index
    %157 = vector.load %arg14[%c64_131, %c0_132] : memref<288x256xbf16, #tpu.memory_space<vmem>>, vector<32x256xbf16>
    tpu.vector_store %arg14[%c64_131, %c0_132], %156 {strides = array<i32>} : memref<288x256xbf16, #tpu.memory_space<vmem>>, vector<32x256xbf16>,
    %158 = vector.extract_strided_slice %148 {offsets = [0, 127], sizes = [32, 256], strides = [1, 1]} : vector<32x512xbf16> to vector<32x256xbf16>
    %c96_133 = arith.constant 96 : index
    %c0_134 = arith.constant 0 : index
    %159 = vector.load %arg14[%c96_133, %c0_134] : memref<288x256xbf16, #tpu.memory_space<vmem>>, vector<32x256xbf16>
    tpu.vector_store %arg14[%c96_133, %c0_134], %158 {strides = array<i32>} : memref<288x256xbf16, #tpu.memory_space<vmem>>, vector<32x256xbf16>,
    %160 = vector.extract_strided_slice %145 {offsets = [0, 128], sizes = [32, 256], strides = [1, 1]} : vector<32x512xbf16> to vector<32x256xbf16>
    %c128_135 = arith.constant 128 : index
    %c0_136 = arith.constant 0 : index
    %161 = vector.load %arg14[%c128_135, %c0_136] : memref<288x256xbf16, #tpu.memory_space<vmem>>, vector<32x256xbf16>
    tpu.vector_store %arg14[%c128_135, %c0_136], %160 {strides = array<i32>} : memref<288x256xbf16, #tpu.memory_space<vmem>>, vector<32x256xbf16>,
    %162 = vector.extract_strided_slice %151 {offsets = [0, 129], sizes = [32, 256], strides = [1, 1]} : vector<32x512xbf16> to vector<32x256xbf16>
    %c160_137 = arith.constant 160 : index
    %c0_138 = arith.constant 0 : index
    %163 = vector.load %arg14[%c160_137, %c0_138] : memref<288x256xbf16, #tpu.memory_space<vmem>>, vector<32x256xbf16>
    tpu.vector_store %arg14[%c160_137, %c0_138], %162 {strides = array<i32>} : memref<288x256xbf16, #tpu.memory_space<vmem>>, vector<32x256xbf16>,
    %164 = vector.extract_strided_slice %148 {offsets = [0, 143], sizes = [32, 256], strides = [1, 1]} : vector<32x512xbf16> to vector<32x256xbf16>
    %c192_139 = arith.constant 192 : index
    %c0_140 = arith.constant 0 : index
    %165 = vector.load %arg14[%c192_139, %c0_140] : memref<288x256xbf16, #tpu.memory_space<vmem>>, vector<32x256xbf16>
    tpu.vector_store %arg14[%c192_139, %c0_140], %164 {strides = array<i32>} : memref<288x256xbf16, #tpu.memory_space<vmem>>, vector<32x256xbf16>,
    %166 = vector.extract_strided_slice %145 {offsets = [0, 144], sizes = [32, 256], strides = [1, 1]} : vector<32x512xbf16> to vector<32x256xbf16>
    %c224_141 = arith.constant 224 : index
    %c0_142 = arith.constant 0 : index
    %167 = vector.load %arg14[%c224_141, %c0_142] : memref<288x256xbf16, #tpu.memory_space<vmem>>, vector<32x256xbf16>
    tpu.vector_store %arg14[%c224_141, %c0_142], %166 {strides = array<i32>} : memref<288x256xbf16, #tpu.memory_space<vmem>>, vector<32x256xbf16>,
    %168 = vector.extract_strided_slice %151 {offsets = [0, 145], sizes = [32, 256], strides = [1, 1]} : vector<32x512xbf16> to vector<32x256xbf16>
    %c256_143 = arith.constant 256 : index
    %c0_144 = arith.constant 0 : index
    %169 = vector.load %arg14[%c256_143, %c0_144] : memref<288x256xbf16, #tpu.memory_space<vmem>>, vector<32x256xbf16>
    tpu.vector_store %arg14[%c256_143, %c0_144], %168 {strides = array<i32>} : memref<288x256xbf16, #tpu.memory_space<vmem>>, vector<32x256xbf16>,
    %c0_145 = arith.constant 0 : index
    %c0_146 = arith.constant 0 : index
    %170 = vector.load %arg4[%c0_145, %c0_146] : memref<32x288xbf16, #tpu.memory_space<vmem>>, vector<32x288xbf16>
    %c0_147 = arith.constant 0 : index
    %c0_148 = arith.constant 0 : index
    %171 = vector.load %arg14[%c0_147, %c0_148] : memref<288x256xbf16, #tpu.memory_space<vmem>>, vector<288x256xbf16>
    %cst_149 = arith.constant dense<0.000000e+00> : vector<32x256xf32>
    %172 = tpu.matmul %170, %171, %cst_149 {dimension_numbers = #tpu.dot_dimension_numbers<[1], [0], [0], [1], [0, 0, 1, 1], [], []>} : vector<32x288xbf16>, vector<288x256xbf16>, vector<32x256xf32> -> vector<32x256xf32>
    %c0_150 = arith.constant 0 : index
    %c0_151 = arith.constant 0 : index
    %173 = vector.load %arg5[%c0_150, %c0_151] : memref<32x1xf32, #tpu.memory_space<vmem>>, vector<32x1xf32>
    %174 = vector.broadcast %173 : vector<32x1xf32> to vector<32x256xf32>
    %175 = arith.addf %172, %174 : vector<32x256xf32>
    %cst_152 = arith.constant dense<0.000000e+00> : vector<32xf32>
    %176 = vector.multi_reduction <add>, %175, %cst_152 [1] : vector<32x256xf32> to vector<32xf32>
    %177 = vector.shape_cast %176 : vector<32xf32> to vector<32x1xf32>
    %cst_153 = arith.constant 3.906250e-03 : f32
    %178 = vector.broadcast %cst_153 : f32 to vector<32x1xf32>
    %179 = arith.mulf %177, %178 : vector<32x1xf32>
    %c0_154 = arith.constant 0 : index
    %c0_155 = arith.constant 0 : index
    %180 = vector.load %arg6[%c0_154, %c0_155] : memref<8x32xf32, #tpu.memory_space<vmem>>, vector<8x32xf32>
    %cst_156 = arith.constant dense<0.000000e+00> : vector<8x1xf32>
    %181 = tpu.matmul %180, %179, %cst_156 {dimension_numbers = #tpu.dot_dimension_numbers<[1], [0], [0], [1], [0, 0, 1, 1], [], []>} : vector<8x32xf32>, vector<32x1xf32>, vector<8x1xf32> -> vector<8x1xf32>
    %c0_157 = arith.constant 0 : index
    %c0_158 = arith.constant 0 : index
    %182 = vector.load %arg7[%c0_157, %c0_158] : memref<8x1xf32, #tpu.memory_space<vmem>>, vector<8x1xf32>
    %183 = arith.addf %181, %182 : vector<8x1xf32>
    %cst_159 = arith.constant 0.000000e+00 : f32
    %184 = vector.broadcast %cst_159 : f32 to vector<8x1xf32>
    %185 = arith.maximumf %183, %184 : vector<8x1xf32>
    %c0_160 = arith.constant 0 : index
    %c0_161 = arith.constant 0 : index
    %186 = vector.load %arg8[%c0_160, %c0_161] : memref<32x8xf32, #tpu.memory_space<vmem>>, vector<32x8xf32>
    %cst_162 = arith.constant dense<0.000000e+00> : vector<32x1xf32>
    %187 = tpu.matmul %186, %185, %cst_162 {dimension_numbers = #tpu.dot_dimension_numbers<[1], [0], [0], [1], [0, 0, 1, 1], [], []>} : vector<32x8xf32>, vector<8x1xf32>, vector<32x1xf32> -> vector<32x1xf32>
    %c0_163 = arith.constant 0 : index
    %c0_164 = arith.constant 0 : index
    %188 = vector.load %arg9[%c0_163, %c0_164] : memref<32x1xf32, #tpu.memory_space<vmem>>, vector<32x1xf32>
    %189 = arith.addf %187, %188 : vector<32x1xf32>
    %190 = arith.negf %189 : vector<32x1xf32>
    %191 = math.exp %190 : vector<32x1xf32>
    %cst_165 = arith.constant 1.000000e+00 : f32
    %192 = vector.broadcast %cst_165 : f32 to vector<32x1xf32>
    %193 = arith.addf %192, %191 : vector<32x1xf32>
    %194 = arith.divf %192, %193 : vector<32x1xf32>
    %195 = vector.broadcast %194 : vector<32x1xf32> to vector<32x256xf32>
    %196 = arith.mulf %175, %195 : vector<32x256xf32>
    %197 = arith.addf %196, %104 : vector<32x256xf32>
    %c1_166 = arith.constant 1 : index
    %c0_167 = arith.constant 0 : index
    %c0_168 = arith.constant 0 : index
    %198 = vector.load %arg12[%c1_166, %c0_167, %c0_168] : memref<2x32x256xf32, #tpu.memory_space<vmem>>, vector<1x32x256xf32>
    %199 = vector.shape_cast %198 : vector<1x32x256xf32> to vector<32x256xf32>
    %200 = vector.shape_cast %197 : vector<32x256xf32> to vector<1x32x256xf32>
    tpu.vector_store %arg12[%c1_166, %c0_167, %c0_168], %200 {strides = array<i32>} : memref<2x32x256xf32, #tpu.memory_space<vmem>>, vector<1x32x256xf32>,
    return
  }
  func.func @transform_0(%arg0: i32) -> (i32, i32, i32) {
    %c0_i32 = arith.constant 0 : i32
    %c0_i32_0 = arith.constant 0 : i32
    %c0_i32_1 = arith.constant 0 : i32
    return %arg0, %c0_i32, %c0_i32_0 : i32, i32, i32
  }
  func.func @transform_1(%arg0: i32) -> (i32, i32) {
    %c0_i32 = arith.constant 0 : i32
    %c0_i32_0 = arith.constant 0 : i32
    %c0_i32_1 = arith.constant 0 : i32
    return %c0_i32, %c0_i32_0 : i32, i32
  }
  func.func @transform_2(%arg0: i32) -> (i32, i32) {
    %c0_i32 = arith.constant 0 : i32
    %c0_i32_0 = arith.constant 0 : i32
    %c0_i32_1 = arith.constant 0 : i32
    return %c0_i32, %c0_i32_0 : i32, i32
  }
  func.func @transform_3(%arg0: i32) -> (i32, i32) {
    %c0_i32 = arith.constant 0 : i32
    %c0_i32_0 = arith.constant 0 : i32
    %c0_i32_1 = arith.constant 0 : i32
    return %c0_i32, %c0_i32_0 : i32, i32
  }
  func.func @transform_4(%arg0: i32) -> (i32, i32) {
    %c0_i32 = arith.constant 0 : i32
    %c0_i32_0 = arith.constant 0 : i32
    %c0_i32_1 = arith.constant 0 : i32
    return %c0_i32, %c0_i32_0 : i32, i32
  }
  func.func @transform_5(%arg0: i32) -> (i32, i32) {
    %c0_i32 = arith.constant 0 : i32
    %c0_i32_0 = arith.constant 0 : i32
    %c0_i32_1 = arith.constant 0 : i32
    return %c0_i32, %c0_i32_0 : i32, i32
  }
  func.func @transform_6(%arg0: i32) -> (i32, i32) {
    %c0_i32 = arith.constant 0 : i32
    %c0_i32_0 = arith.constant 0 : i32
    %c0_i32_1 = arith.constant 0 : i32
    return %c0_i32, %c0_i32_0 : i32, i32
  }
  func.func @transform_7(%arg0: i32) -> (i32, i32) {
    %c0_i32 = arith.constant 0 : i32
    %c0_i32_0 = arith.constant 0 : i32
    %c0_i32_1 = arith.constant 0 : i32
    return %c0_i32, %c0_i32_0 : i32, i32
  }
  func.func @transform_8(%arg0: i32) -> (i32, i32) {
    %c0_i32 = arith.constant 0 : i32
    %c0_i32_0 = arith.constant 0 : i32
    %c0_i32_1 = arith.constant 0 : i32
    return %c0_i32, %c0_i32_0 : i32, i32
  }
  func.func @transform_9(%arg0: i32) -> (i32, i32) {
    %c0_i32 = arith.constant 0 : i32
    %c0_i32_0 = arith.constant 0 : i32
    %c0_i32_1 = arith.constant 0 : i32
    return %c0_i32, %c0_i32_0 : i32, i32
  }
  func.func @transform_10(%arg0: i32) -> i32 {
    %c0_i32 = arith.constant 0 : i32
    %c0_i32_0 = arith.constant 0 : i32
    return %c0_i32 : i32
  }
  func.func @transform_11(%arg0: i32) -> (i32, i32, i32) {
    %c0_i32 = arith.constant 0 : i32
    %c0_i32_0 = arith.constant 0 : i32
    %c0_i32_1 = arith.constant 0 : i32
    return %arg0, %c0_i32, %c0_i32_0 : i32, i32, i32
  }
}

</mosaic_0001>

<bundles_post_ra>
// kernel: tpu_custom_call.1
= control target key start
LH: loop header
LB: loop body
LE: loop exit
PB: predicated region body
PF: predicated region fallthrough
CT: control target
= control target key end

     0   :  { %17 = vsyncpa [#allocation6], 0  ;;  %s4354_s0 = inlined_call_operand.vmem [shape: f32[2,32,256], index: 0, kind: input, shape index: {}]   ;;  %s4355_s1 = inlined_call_operand.hbm [shape: bf16[32,288], index: 1, kind: input, shape index: {}]   ;;  %s4356_s2 = inlined_call_operand.vmem [shape: f32[32,1], index: 2, kind: input, shape index: {}]   ;;  %s4357_s3 = inlined_call_operand.hbm [shape: bf16[32,288], index: 3, kind: input, shape index: {}]   ;;  %s4358_s4 = inlined_call_operand.vmem [shape: f32[32,1], index: 4, kind: input, shape index: {}]   ;;  %s4359_s5 = inlined_call_operand.vmem [shape: f32[8,32], index: 5, kind: input, shape index: {}]   ;;  %s4360_s6 = inlined_call_operand.vmem [shape: f32[8,1], index: 6, kind: input, shape index: {}]   ;;  %s4361_s7 = inlined_call_operand.vmem [shape: f32[32,8], index: 7, kind: input, shape index: {}]   ;;  %s4362_s8 = inlined_call_operand.vmem [shape: f32[32,1], index: 8, kind: input, shape index: {}]   ;;  %s4363_s9 = inlined_call_operand.vmem [shape: bf16[2,512], index: 9, kind: input, shape index: {}]   ;;  %s4364_s10 = inlined_call_operand.<no memory space> [shape: f32[1], index: 10, kind: input, shape index: {}]   ;;  %s4365_s11 = inlined_call_operand.hbm [shape: f32[2,32,256], index: 11, kind: output, shape index: {}]  }
   0x1   :  { %18 = vsyncpa [#allocation9], 0 }
   0x2   :  { %19 = vsyncpa [#allocation7], 0  ;;  %s3267_s17 = smov [#allocation5]   ;;  %s3195_s21 = scalar_lea.hbm %s4355_s1, 768 }
   0x3   :  { %s27_s18 = sshll.u32 %s3267_s17, 4  ;;  %p3196_p0 = scmp.ne.s32.totalorder %s4355_s1, %s3195_s21  ;;  %s28_s18 = int_to_ptr.vmem [resolvable:$true] %s27_s18 }
   0x4   :  { %p3199_p1 = scmp.lt.u32.totalorder %s3195_s21, %s4355_s1 }
   0x6   :  { %p3201_p2 = pnand %p3199_p1, %p3196_p0 }
   0x8   :  { %3204 = shalt.err (!%p3201_p2)
}
   0x9   :  { %s3205_s26 = scalar_lea.vmem %s28_s18, 768  ;;  %p3210_p4 = scmp.lt.s32.totalorder %s28_s18, %s28_s18 }
   0xa   :  { %p3206_p3 = scmp.ne.s32.totalorder %s28_s18, %s3205_s26  ;;  %p3211_p5 = scmp.lt.s32.totalorder %s3205_s26, %s3205_s26 }
   0xc   :  { %p3212_p6 = por %p3211_p5, %p3210_p4 }
   0xe   :  { %p3213_p7 = pnand %p3212_p6, %p3206_p3 }
  0x10   :  { %3216 = shalt.err (!%p3213_p7)
}
  0x11   :  { %s3268_s27 = smov 192   ;;  %s3269_s28 = smov 12  }
  0x12   :  { %33 = dma.hbm_to_vmem [thread:$0]  %s4355_s1, 768, %s28_s18, [#allocation6], %s3268_s27, %s3268_s27, %s3269_s28  }
  0x13   :  { %s3270_s12 = smov [#allocation8]   ;;  %s3217_s16 = scalar_lea.hbm %s4357_s3, 768 }
  0x14   :  { %s41_s13 = sshll.u32 %s3270_s12, 4  ;;  %p3218_p8 = scmp.ne.s32.totalorder %s4357_s3, %s3217_s16  ;;  %s42_s13 = int_to_ptr.vmem [resolvable:$true] %s41_s13 }
  0x15   :  { %p3221_p9 = scmp.lt.u32.totalorder %s3217_s16, %s4357_s3 }
  0x17   :  { %p3223_p10 = pnand %p3221_p9, %p3218_p8 }
  0x19   :  { %3226 = shalt.err (!%p3223_p10)
}
  0x1a   :  { %s3227_s22 = scalar_lea.vmem %s42_s13, 768  ;;  %p3232_p12 = scmp.lt.s32.totalorder %s42_s13, %s42_s13 }
  0x1b   :  { %p3228_p11 = scmp.ne.s32.totalorder %s42_s13, %s3227_s22  ;;  %p3233_p13 = scmp.lt.s32.totalorder %s3227_s22, %s3227_s22 }
  0x1d   :  { %p3234_p0 = por %p3233_p13, %p3232_p12 }
  0x1f   :  { %p3235_p1 = pnand %p3234_p0, %p3228_p11 }
  0x21   :  { %3238 = shalt.err (!%p3235_p1)
}
  0x22   :  { %47 = dma.hbm_to_vmem [thread:$0]  %s4357_s3, 768, %s42_s13, [#allocation9], %s3268_s27, %s3268_s27, %s3269_s28  }
  0x23   :  { %3261 = dma.done.wait [#allocation6], 768  }
  0x24   :  { %3262 = vsyncadd [#allocation6], 4294966528 }
  0x25   :  { %3263 = dma.done.wait [#allocation9], 768  }
  0x26   :  { %3264 = vsyncadd [#allocation9], 4294966528  ;;  %v111_v0 = vlaneseq  ;;  %v3271_v1 = vmov 1966171168   ;;  %v3272_v3 = vmov 0   ;;  %s3273_s23 = smov 16  }
  0x27   :  { %v109_v2 = vunpack.c.l.s4 %v3271_v1  ;;  %3095 = vset.pattern.permute.xlu1 %v3272_v3  ;;  %3096 = vset.pattern.permute.xlu0 %v3272_v3  ;;  %v75_v7 = vld [vmem:[%s4354_s0 + $0x8] sm:$0xff]  ;;  %v77_v8 = vld [vmem:[%s4354_s0 + $0x18] sm:$0xff]  ;;  %v74_v9 = vld [vmem:[%s4354_s0] sm:$0xff]  ;;  %s3274_s1 = smov 17   ;;  %s3275_s18 = smov 15   ;;  %vm214_vm0 = vcmask 138240  }
  0x28   :  { %v112_v4 = vshrl.u32 %v111_v0, 7  ;;  %3091 = vrot.lane.b32.xlu0 %v3272_v3, %s3273_s23  ;;  %v3385_v10 = vpack.c.bf16 %v77_v8, %v75_v7  ;;  %v76_v11 = vld [vmem:[%s4354_s0 + $0x10] sm:$0xff]  ;;  %v78_v12 = vld [vmem:[%s4354_s0 + $0x20] sm:$0xff]  ;;  %v79_v27 = vld [vmem:[%s4354_s0 + $0x28] sm:$0xff]  ;;  %s3276_s3 = smov 1   ;;  %s3277_s24 = smov 127  }
  0x29   :  { %v110_v5 = vunpack.c.0.s8 %v109_v2  ;;  %v80_v13 = vld [vmem:[%s4354_s0 + $0x30] sm:$0xff]  ;;  %v3396_v14 = vpack.c.bf16 %v76_v11, %v74_v9  ;;  %v2875_v15 = vld.sshfl [vmem:[%s4363_s9] sm:$0x33 pattern:$0x75316420]  ;;  %v81_v28 = vld [vmem:[%s4354_s0 + $0x38] sm:$0xff] }
  0x2a   :  { %237 = vrot.lane.b32.xlu1 %v3385_v10, %s3273_s23  ;;  %v3403_v16 = vpack.c.bf16 %v80_v13, %v78_v12  ;;  %v3406_v18 = vsub.s32 0, %v112_v4  ;;  %v107_v19 = vcombine.high %v2875_v15, %v2875_v15  ;;  %v3435_v36 = vpack.c.bf16 %v81_v28, %v79_v27  ;;  %s3278_s25 = smov 113   ;;  %s3279_s26 = smov 112   ;;  %v3114_v58 = vld [vmem:[#allocation5 + $0x4] ss:$12 sps:$4 sm:$0xff]   ;;  %v469_v60 = vld [vmem:[%s4356_s2 + $0x8] sm:$0xff] }
  0x2b   :  { %v3374_v6 = vsub.s32 %v110_v5, %v112_v4  ;;  %561 = vmatprep.mubr.bf16.mxu0 %v3114_v58  ;;  %s3280_s27 = smov 111   ;;  %v468_v59 = vld [vmem:[%s4356_s2] sm:$0xff]  ;;  %v3532_v61 = vld [vmem:[%s4356_s2 + $0x10] sm:$0xff]  ;;  %v471_v62 = vld [vmem:[%s4356_s2 + $0x18] sm:$0xff]  ;;  %vm245_vm1 = vcmask 130048   ;;  %vm276_vm2 = vcmask 121856  }
  0x2c   :  { %235 = vrot.lane.b32.xlu0 %v3396_v14, %s3273_s23  ;;  %vm301_vm3 = vcmask 7168   ;;  %vm332_vm4 = vcmask 1039360   ;;  %vm359_vm5 = vcmask 924672   ;;  %vm386_vm6 = vcmask 916480  }
  0x2d   :  { %v114_v17 = vrot.slane %v2875_v15, %v3374_v6  ;;  %v121_v21 = vrot.slane %v107_v19, %v3374_v6  ;;  %vm411_vm7 = vcmask 908288   ;;  %vm522_vm8 = vcmask 261120  }
  0x2e   :  { %241 = vrot.lane.b32.xlu1 %v3403_v16, %s3273_s23 }
  0x2f   :  { %v125_v20 = vpack.i.b16 %v114_v17, %v114_v17  ;;  %v122_v22 = vcombine.high %v114_v17, %v114_v17  ;;  %v132_v24 = vpack.i.b16 %v121_v21, %v121_v21  ;;  %v167_v26 = vshrl.u32 %v121_v21, 16 }
  0x30   :  { %v160_v34 = vshrl.u32 %v114_v17, 16  ;;  %v123_v50 = vcombine.high %v121_v21, %v121_v21 }
  0x31   :  { %v130_v23 = vrot.slane %v125_v20, %v3406_v18  ;;  %v139_v25 = vpack.i.b16 %v122_v22, %v122_v22  ;;  %v3423_v30 = vrot.slane %v132_v24, %v3406_v18  ;;  %v168_v33 = vpack.i.b16 %v167_v26, %v167_v26 }
  0x32   :  { %v174_v37 = vshrl.u32 %v122_v22, 16  ;;  %v161_v40 = vpack.i.b16 %v160_v34, %v160_v34  ;;  %v181_v51 = vshrl.u32 %v123_v50, 16  ;;  %v146_v55 = vpack.i.b16 %v123_v50, %v123_v50 }
  0x33   :  { %v3420_v29 = vmul.bf16 0, %v130_v23  ;;  %v3426_v31 = vrot.slane %v139_v25, %v3406_v18  ;;  %v153_v32 = vmul.bf16 %v3423_v30, %v3396_v14  ;;  %v157_v38 = vmul.bf16 %v3423_v30, %v3403_v16 }
  0x34   :  { %v3442_v39 = vrot.slane %v168_v33, %v3406_v18  ;;  %v175_v42 = vpack.i.b16 %v174_v37, %v174_v37  ;;  %v166_v44 = vrot.slane %v161_v40, %v3406_v18  ;;  %v182_v52 = vpack.i.b16 %v181_v51, %v181_v51 }
  0x35   :  { %202 = vrot.lane.b32.xlu1 %v3420_v29, %s3274_s1  ;;  %204 = vrot.lane.b32.xlu0 %v153_v32, %s3274_s1  ;;  %v154_v35 = vmul.bf16 %v3426_v31, %v3385_v10  ;;  %v158_v41 = vmul.bf16 %v3426_v31, %v3435_v36  ;;  %v151_v56 = vrot.slane %v146_v55, %v3406_v18 }
  0x36   :  { %v189_v43 = vmul.bf16 %v3442_v39, %v3396_v14  ;;  %v3453_v45 = vrot.slane %v175_v42, %v3406_v18  ;;  %v3456_v46 = vmul.bf16 0, %v166_v44  ;;  %v193_v49 = vmul.bf16 %v3442_v39, %v3403_v16 }
  0x37   :  { %v187_v53 = vrot.slane %v182_v52, %v3406_v18  ;;  %v3494_v57 = vmul.bf16 0, %v151_v56 }
  0x38   :  { %v190_v47 = vmul.bf16 %v3453_v45, %v3385_v10  ;;  %v194_v48 = vmul.bf16 %v3453_v45, %v3435_v36 }
  0x39   :  { %208 = vrot.lane.b32.xlu1 %v3420_v29, %s3274_s1  ;;  %206 = vrot.lane.b32.xlu0 %v154_v35, %s3274_s1  ;;  %v3483_v54 = vmul.bf16 0, %v187_v53 }
  0x3d   :  { %210 = vrot.lane.b32.xlu1 %v157_v38, %s3274_s1  ;;  %212 = vrot.lane.b32.xlu0 %v158_v41, %s3274_s1 }
  0x41   :  { %266 = vrot.lane.b32.xlu1 %v189_v43, %s3275_s18  ;;  %243 = vrot.lane.b32.xlu0 %v3435_v36, %s3273_s23 }
  0x45   :  { %264 = vrot.lane.b32.xlu1 %v3456_v46, %s3275_s18  ;;  %268 = vrot.lane.b32.xlu0 %v190_v47, %s3275_s18 }
  0x49   :  { %274 = vrot.lane.b32.xlu1 %v194_v48, %s3275_s18  ;;  %272 = vrot.lane.b32.xlu0 %v193_v49, %s3275_s18 }
  0x4d   :  { %291 = vrot.lane.b32.xlu1 %v153_v32, %s3276_s3  ;;  %270 = vrot.lane.b32.xlu0 %v3456_v46, %s3275_s18 }
  0x51   :  { %289 = vrot.lane.b32.xlu1 %v3420_v29, %s3276_s3  ;;  %293 = vrot.lane.b32.xlu0 %v154_v35, %s3276_s3 }
  0x55   :  { %299 = vrot.lane.b32.xlu1 %v158_v41, %s3276_s3  ;;  %297 = vrot.lane.b32.xlu0 %v157_v38, %s3276_s3 }
  0x59   :  { %322 = vrot.lane.b32.xlu1 %v190_v47, %s3277_s24  ;;  %295 = vrot.lane.b32.xlu0 %v3420_v29, %s3276_s3 }
  0x5d   :  { %320 = vrot.lane.b32.xlu1 %v189_v43, %s3277_s24  ;;  %324 = vrot.lane.b32.xlu0 %v3483_v54, %s3277_s24 }
  0x61   :  { %330 = vrot.lane.b32.xlu1 %v3483_v54, %s3277_s24  ;;  %328 = vrot.lane.b32.xlu0 %v194_v48, %s3277_s24 }
  0x65   :  { %349 = vrot.lane.b32.xlu1 %v154_v35, %s3278_s25  ;;  %326 = vrot.lane.b32.xlu0 %v193_v49, %s3277_s24 }
  0x69   :  { %347 = vrot.lane.b32.xlu1 %v153_v32, %s3278_s25  ;;  %351 = vrot.lane.b32.xlu0 %v3494_v57, %s3278_s25 }
  0x6d   :  { %357 = vrot.lane.b32.xlu1 %v3494_v57, %s3278_s25  ;;  %355 = vrot.lane.b32.xlu0 %v158_v41, %s3278_s25 }
  0x71   :  { %376 = vrot.lane.b32.xlu1 %v3385_v10, %s3279_s26  ;;  %353 = vrot.lane.b32.xlu0 %v157_v38, %s3278_s25 }
  0x75   :  { %374 = vrot.lane.b32.xlu1 %v3396_v14, %s3279_s26  ;;  %378 = vrot.lane.b32.xlu0 %v3272_v3, %s3279_s26 }
  0x79   :  { %384 = vrot.lane.b32.xlu1 %v3272_v3, %s3279_s26  ;;  %382 = vrot.lane.b32.xlu0 %v3435_v36, %s3279_s26 }
  0x7d   :  { %401 = vrot.lane.b32.xlu1 %v190_v47, %s3280_s27  ;;  %380 = vrot.lane.b32.xlu0 %v3403_v16, %s3279_s26 }
  0x81   :  { %399 = vrot.lane.b32.xlu1 %v189_v43, %s3280_s27  ;;  %403 = vrot.lane.b32.xlu0 %v3483_v54, %s3280_s27 }
  0x85   :  { %409 = vrot.lane.b32.xlu1 %v3483_v54, %s3280_s27  ;;  %407 = vrot.lane.b32.xlu0 %v194_v48, %s3280_s27 }
  0x89   :  { %405 = vrot.lane.b32.xlu0 %v193_v49, %s3280_s27  ;;  %474 = vperm.xlu1 %3095, %v468_v59  }
  0x8d   :  { %479 = vperm.xlu0 %3096, %v469_v60   ;;  %484 = vperm.xlu1 %3095, %v3532_v61  }
  0x91   :  { %780 = vrot.lane.b32.xlu0 %v3420_v29, %s3274_s1  ;;  %489 = vperm.xlu1 %3095, %v471_v62  }
  0x95   :  { %786 = vrot.lane.b32.xlu1 %v3420_v29, %s3274_s1  ;;  %3098 = vrot.lane.b32.xlu0 %v3272_v3, %s3273_s23 }
  0x9a   :  { %v3092_v63 = vpop.permute.xlu0 %3091 }
  0x9b   :  { %v3093_v19 = vunpack.i.l.bf16 %v3092_v63  ;;  %v3094_v26 = vunpack.i.h.bf16 %v3092_v63 }
  0x9c   :  { %v238_v0 = vpop.permute.xlu1 %237 }
  0x9e   :  { %v236_v2 = vpop.permute.xlu0 %235 }
  0x9f   :  { %v247_v21 = vsel %vm245_vm1, %v236_v2, %v238_v0  ;;  %v246_v23 = vsel %vm245_vm1, %v3093_v19, %v236_v2 }
  0xa0   :  { %v242_v1 = vpop.permute.xlu1 %241 }
  0xa1   :  { %v248_v28 = vsel %vm245_vm1, %v3094_v26, %v242_v1 }
  0xa7   :  { %v203_v4 = vpop.permute.xlu1 %202  ;;  %v205_v5 = vpop.permute.xlu0 %204 }
  0xa8   :  { %v215_v11 = vsel %vm214_vm0, %v203_v4, %v205_v5 }
  0xab   :  { %v209_v7 = vpop.permute.xlu1 %208  ;;  %v207_v8 = vpop.permute.xlu0 %206 }
  0xac   :  { %v216_v9 = vsel %vm214_vm0, %v205_v5, %v207_v8 }
  0xad   :  { %529 = vmatprep.subr.bf16.mxu0 %v216_v9 }
  0xae   :  { %530 = vmatpush1.bf16.msra.mxu0 %v215_v11 }
  0xaf   :  { %v211_v12 = vpop.permute.xlu1 %210  ;;  %v213_v13 = vpop.permute.xlu0 %212 }
  0xb0   :  { %v217_v15 = vsel %vm214_vm0, %v209_v7, %v211_v12  ;;  %v218_v17 = vsel %vm214_vm0, %v211_v12, %v213_v13 }
  0xb1   :  { %531 = vmatprep.subr.bf16.mxu0 %v218_v17 }
  0xb2   :  { %532 = vmatpush1.bf16.msra.mxu0 %v217_v15 }
  0xb3   :  { %v267_v20 = vpop.permute.xlu1 %266  ;;  %533 = vmatprep.subr.bf16.mxu0 %v247_v21  ;;  %v244_v22 = vpop.permute.xlu0 %243 }
  0xb4   :  { %v249_v25 = vsel %vm245_vm1, %v242_v1, %v244_v22 }
  0xb6   :  { %534 = vmatpush1.bf16.msra.mxu0 %v246_v23 }
  0xb7   :  { %v265_v24 = vpop.permute.xlu1 %264  ;;  %535 = vmatprep.subr.bf16.mxu0 %v249_v25  ;;  %v269_v27 = vpop.permute.xlu0 %268  ;;  %v3112_v25 = vld [vmem:[#allocation5] ss:$12 sps:$4 sm:$0xff]  }
  0xb8   :  { %v278_v33 = vsel %vm276_vm2, %v267_v20, %v269_v27  ;;  %v277_v35 = vsel %vm276_vm2, %v265_v24, %v267_v20  ;;  %v3115_v27 = vld [vmem:[#allocation5 + $0x1c] ss:$12 sps:$4 sm:$0xff]  }
  0xba   :  { %536 = vmatpush1.bf16.msra.mxu0 %v248_v28 }
  0xbb   :  { %v275_v32 = vpop.permute.xlu1 %274  ;;  %537 = vmatprep.subr.bf16.mxu0 %v278_v33  ;;  %v273_v34 = vpop.permute.xlu0 %272 }
  0xbc   :  { %v280_v38 = vsel %vm276_vm2, %v273_v34, %v275_v32 }
  0xbe   :  { %538 = vmatpush1.bf16.msra.mxu0 %v277_v35 }
  0xbf   :  { %v292_v37 = vpop.permute.xlu1 %291  ;;  %539 = vmatprep.subr.bf16.mxu0 %v280_v38  ;;  %v271_v40 = vpop.permute.xlu0 %270 }
  0xc0   :  { %v279_v41 = vsel %vm276_vm2, %v271_v40, %v273_v34 }
  0xc2   :  { %540 = vmatpush1.bf16.msra.mxu0 %v279_v41 }
  0xc3   :  { %v290_v42 = vpop.permute.xlu1 %289  ;;  %v294_v43 = vpop.permute.xlu0 %293 }
  0xc4   :  { %v302_v44 = vsel %vm301_vm3, %v290_v42, %v292_v37  ;;  %v303_v47 = vsel %vm301_vm3, %v292_v37, %v294_v43  ;;  %v3117_v37 = vld [vmem:[#allocation5 + $0x18] ss:$12 sps:$4 sm:$0xff]   ;;  %v3118_v42 = vld [vmem:[#allocation5 + $0x8] ss:$12 sps:$4 sm:$0xff]   ;;  %v3119_v43 = vld [vmem:[#allocation5 + $0x20] ss:$12 sps:$4 sm:$0xff]  }
  0xc5   :  { %541 = vmatprep.subr.bf16.mxu0 %v303_v47 }
  0xc6   :  { %542 = vmatpush1.bf16.msra.mxu0 %v302_v44 }
  0xc7   :  { %v300_v48 = vpop.permute.xlu1 %299  ;;  %v298_v49 = vpop.permute.xlu0 %297 }
  0xc8   :  { %v305_v50 = vsel %vm301_vm3, %v298_v49, %v300_v48  ;;  %v3587_v48 = vstv %s4364_s10  ;;  %s3284_s10 = smov [#allocation10]  }
  0xc9   :  { %543 = vmatprep.subr.bf16.mxu0 %v305_v50  ;;  %s2862_s20 = sshll.u32 %s3284_s10, 4  ;;  %s2863_s20 = int_to_ptr.vmem [resolvable:$true] %s2862_s20 }
  0xca   :  { %s3239_s29 = scalar_lea.vmem %s2863_s20, 2048  ;;  %p3244_p3 = scmp.lt.s32.totalorder %s2863_s20, %s2863_s20 }
  0xcb   :  { %v323_v51 = vpop.permute.xlu1 %322  ;;  %v296_v52 = vpop.permute.xlu0 %295  ;;  %p3240_p2 = scmp.ne.s32.totalorder %s2863_s20, %s3239_s29  ;;  %p3245_p4 = scmp.lt.s32.totalorder %s3239_s29, %s3239_s29 }
  0xcc   :  { %v304_v53 = vsel %vm301_vm3, %v296_v52, %v298_v49 }
  0xcd   :  { %544 = vmatpush1.bf16.msra.mxu0 %v304_v53  ;;  %p3246_p5 = por %p3245_p4, %p3244_p3 }
  0xce   :  { %545 = vmatprep.subr.bf16.mxu0 %v3385_v10 }
  0xcf   :  { %v321_v55 = vpop.permute.xlu1 %320  ;;  %v325_v56 = vpop.permute.xlu0 %324  ;;  %p3247_p6 = pnand %p3246_p5, %p3240_p2 }
  0xd0   :  { %v334_v60 = vsel %vm332_vm4, %v323_v51, %v325_v56  ;;  %v333_v0 = vsel %vm332_vm4, %v321_v55, %v323_v51 }
  0xd1   :  { %546 = vmatpush1.bf16.msra.mxu0 %v3396_v14 }
  0xd2   :  { %547 = vmatprep.subr.bf16.mxu0 %v3435_v36 }
  0xd3   :  { %v331_v58 = vpop.permute.xlu1 %330  ;;  %v329_v59 = vpop.permute.xlu0 %328 }
  0xd4   :  { %v336_v10 = vsel %vm332_vm4, %v329_v59, %v331_v58 }
  0xd5   :  { %548 = vmatpush1.bf16.msra.mxu0 %v3403_v16 }
  0xd6   :  { %549 = vmatprep.subr.bf16.mxu0 %v334_v60 }
  0xd7   :  { %v350_v62 = vpop.permute.xlu1 %349  ;;  %v327_v63 = vpop.permute.xlu0 %326 }
  0xd8   :  { %v335_v36 = vsel %vm332_vm4, %v327_v63, %v329_v59 }
  0xd9   :  { %550 = vmatpush1.bf16.msra.mxu0 %v333_v0 }
  0xda   :  { %551 = vmatprep.subr.bf16.mxu0 %v336_v10 }
  0xdb   :  { %v348_v1 = vpop.permute.xlu1 %347  ;;  %v352_v14 = vpop.permute.xlu0 %351 }
  0xdc   :  { %v361_v2 = vsel %vm359_vm5, %v350_v62, %v352_v14  ;;  %v360_v5 = vsel %vm359_vm5, %v348_v1, %v350_v62 }
  0xdd   :  { %552 = vmatpush1.bf16.msra.mxu0 %v335_v36 }
  0xde   :  { %553 = vmatprep.subr.bf16.mxu0 %v361_v2 }
  0xdf   :  { %v358_v16 = vpop.permute.xlu1 %357  ;;  %v356_v4 = vpop.permute.xlu0 %355 }
  0xe0   :  { %v363_v7 = vsel %vm359_vm5, %v356_v4, %v358_v16 }
  0xe1   :  { %554 = vmatpush1.bf16.msra.mxu0 %v360_v5 }
  0xe2   :  { %555 = vmatprep.subr.bf16.mxu0 %v363_v7 }
  0xe3   :  { %v377_v8 = vpop.permute.xlu1 %376  ;;  %v354_v9 = vpop.permute.xlu0 %353 }
  0xe4   :  { %v362_v11 = vsel %vm359_vm5, %v354_v9, %v356_v4 }
  0xe5   :  { %556 = vmatpush1.bf16.msra.mxu0 %v362_v11 }
  0xe7   :  { %v375_v12 = vpop.permute.xlu1 %374  ;;  %v379_v13 = vpop.permute.xlu0 %378 }
  0xe8   :  { %v387_v15 = vsel %vm386_vm6, %v375_v12, %v377_v8  ;;  %v388_v17 = vsel %vm386_vm6, %v377_v8, %v379_v13 }
  0xe9   :  { %557 = vmatprep.subr.bf16.mxu0 %v388_v17 }
  0xea   :  { %558 = vmatpush1.bf16.msra.mxu0 %v387_v15 }
  0xeb   :  { %v385_v19 = vpop.permute.xlu1 %384  ;;  %v383_v20 = vpop.permute.xlu0 %382 }
  0xec   :  { %v390_v21 = vsel %vm386_vm6, %v383_v20, %v385_v19 }
  0xed   :  { %559 = vmatprep.subr.bf16.mxu0 %v390_v21 }
  0xef   :  { %v402_v22 = vpop.permute.xlu1 %401  ;;  %v381_v23 = vpop.permute.xlu0 %380 }
  0xf0   :  { %v389_v24 = vsel %vm386_vm6, %v381_v23, %v383_v20 }
  0xf1   :  { %560 = vmatpush1.bf16.msra.mxu0 %v389_v24 }
  0xf3   :  { %v400_v26 = vpop.permute.xlu1 %399  ;;  %v404_v28 = vpop.permute.xlu0 %403 }
  0xf4   :  { %v412_v32 = vsel %vm411_vm7, %v400_v26, %v402_v22  ;;  %562 = vmatmul.mubr.bf16.vlgmr.msra.gmra.mrb[0].mxu0 %v3112_v25  ;;  %v413_v33 = vsel %vm411_vm7, %v402_v22, %v404_v28 }
  0xf5   :  { %582 = vmatprep.subr.bf16.mxu0 %v413_v33  ;;  %571 = vmatprep.mubr.bf16.mxu0 %v3115_v27 }
  0xf6   :  { %583 = vmatpush1.bf16.msra.mxu0 %v412_v32 }
  0xf7   :  { %v410_v34 = vpop.permute.xlu1 %409  ;;  %v408_v35 = vpop.permute.xlu0 %407 }
  0xf8   :  { %v415_v38 = vsel %vm411_vm7, %v408_v35, %v410_v34 }
  0xf9   :  { %584 = vmatprep.subr.bf16.mxu0 %v415_v38 }
  0xfb   :  { %v406_v40 = vpop.permute.xlu0 %405 }
  0xfc   :  { %v414_v41 = vsel %vm411_vm7, %v406_v40, %v408_v35  ;;  %572 = vmatmul.mubr.bf16.gmra.mrb[4].mxu0 %v3117_v37 }
  0xfd   :  { %585 = vmatpush1.bf16.msra.mxu0 %v414_v41  ;;  %614 = vmatprep.mubr.bf16.mxu0 %v3272_v3 }
 0x104   :  { %2882 = vmatmul.mubr.msk.bf16.vlgmr.msra.gmra.mrb[0].mxu0 %vm522_vm8, %v3118_v42  ;;  %v2905_v42 = vld [vmem:[%s4354_s0 + $0x58] sm:$0xff] }
 0x105   :  { %624 = vmatprep.mubr.bf16.mxu0 %v3272_v3 }
 0x108   :  { %v475_v44 = vpop.permute.xlu1 %474 }
 0x10c   :  { %2883 = vmatmul.mubr.msk.bf16.gmra.mrb[4].mxu0 %vm522_vm8, %v3119_v43  ;;  %v480_v49 = vpop.permute.xlu0 %479  ;;  %v485_v59 = vpop.permute.xlu1 %484  ;;  %v2902_v43 = vld [vmem:[%s4354_s0 + $0x40] sm:$0xff] }
 0x110   :  { %v490_v8 = vpop.permute.xlu1 %489 }
 0x1d7   :  { %v616_v47 = vpop.f32.mrb[0].mxu0 }
 0x1d8   :  { %v3007_v50 = vadd.f32 %v616_v47, %v475_v44  ;;  %v618_v51 = vpop.f32.mrb[1].mxu0 }
 0x1d9   :  { %v3008_v52 = vadd.f32 %v618_v51, %v475_v44  ;;  %v620_v53 = vpop.f32.mrb[2].mxu0  ;;  %v2904_v44 = vld [vmem:[%s4354_s0 + $0x50] sm:$0xff]  ;;  %v2906_v51 = vld [vmem:[%s4354_s0 + $0x60] sm:$0xff] }
 0x1da   :  { %v644_v55 = vmul.f32 %v3007_v50, %v3587_v48  ;;  %v3009_v56 = vadd.f32 %v620_v53, %v480_v49  ;;  %v622_v58 = vpop.f32.mrb[3].mxu0  ;;  %vm635_vm9 = vcmp.ge.f32.partialorder %v3007_v50, 0.0 }
 0x1db   :  { %v645_v60 = vmul.f32 %v3008_v52, %v3587_v48  ;;  %v3010_v62 = vadd.f32 %v622_v58, %v480_v49  ;;  %vm636_vm10 = vcmp.ge.f32.partialorder %v3008_v52, 0.0 }
 0x1dc   :  { %vm637_vm11 = vcmp.ge.f32.partialorder %v3009_v56, 0.0  ;;  %v646_v63 = vmul.f32 %v3009_v56, %v3587_v48  ;;  %v652_v10 = vsel %vm635_vm9, %v3007_v50, %v644_v55 }
 0x1dd   :  { %vm638_vm12 = vcmp.ge.f32.partialorder %v3010_v62, 0.0  ;;  %v647_v0 = vmul.f32 %v3010_v62, %v3587_v48  ;;  %v653_v14 = vsel %vm636_vm10, %v3008_v52, %v645_v60  ;;  %v2908_v52 = vld [vmem:[%s4354_s0 + $0x70] sm:$0xff]  ;;  %vm3282_vm10 = vmmov 0  }
 0x1de   :  { %v654_v1 = vsel %vm637_vm11, %v3009_v56, %v646_v63  ;;  %v3730_v56 = vpack.c.bf16 %v2904_v44, %v2902_v43  ;;  %v2907_v63 = vld [vmem:[%s4354_s0 + $0x68] sm:$0xff] }
 0x1df   :  { %v3593_v36 = vpack.c.bf16 %v654_v1, %v652_v10  ;;  %v655_v2 = vsel %vm638_vm12, %v3010_v62, %v647_v0  ;;  %v626_v16 = vpop.f32.mrb[4].mxu0  ;;  %v3741_v62 = vpack.c.bf16 %v2908_v52, %v2906_v51  ;;  %v2909_v0 = vld [vmem:[%s4354_s0 + $0x78] sm:$0xff] }
 0x1e0   :  { %v3595_v4 = vpack.c.bf16 %v655_v2, %v653_v14  ;;  %v3011_v5 = vadd.f32 %v626_v16, %v485_v59  ;;  %v628_v7 = vpop.f32.mrb[5].mxu0  ;;  %v781_v14 = vpop.permute.xlu0 %780  ;;  %v3763_v16 = vpack.c.bf16 %v2909_v0, %v2907_v63 }
 0x1e1   :  { %v3012_v9 = vadd.f32 %v628_v7, %v485_v59  ;;  %v630_v11 = vpop.f32.mrb[6].mxu0  ;;  %812 = vrot.lane.b32.xlu0 %v3593_v36, %s3273_s23  ;;  %v731_v20 = vmul.bf16 %v3593_v36, %v3423_v30  ;;  %v767_v22 = vmul.bf16 %v3593_v36, %v3442_v39 }
 0x1e2   :  { %v648_v12 = vmul.f32 %v3011_v5, %v3587_v48  ;;  %v3013_v13 = vadd.f32 %v630_v11, %v490_v8  ;;  %v632_v15 = vpop.f32.mrb[7].mxu0  ;;  %814 = vrot.lane.b32.xlu1 %v3595_v4, %s3273_s23  ;;  %vm639_vm13 = vcmp.ge.f32.partialorder %v3011_v5, 0.0  ;;  %v732_v33 = vmul.bf16 %v3595_v4, %v3426_v31  ;;  %v787_v11 = vpop.permute.xlu1 %786 }
 0x1e3   :  { %v649_v17 = vmul.f32 %v3012_v9, %v3587_v48  ;;  %v3014_v19 = vadd.f32 %v632_v15, %v490_v8  ;;  %vm640_vm14 = vcmp.ge.f32.partialorder %v3012_v9, 0.0  ;;  %v768_v37 = vmul.bf16 %v3595_v4, %v3453_v45 }
 0x1e4   :  { %vm641_vm15 = vcmp.ge.f32.partialorder %v3013_v13, 0.0  ;;  %v650_v21 = vmul.f32 %v3013_v13, %v3587_v48  ;;  %v656_v24 = vsel %vm639_vm13, %v3011_v5, %v648_v12 }
 0x1e5   :  { %vm642_vm9 = vcmp.ge.f32.partialorder %v3014_v19, 0.0  ;;  %v651_v23 = vmul.f32 %v3014_v19, %v3587_v48  ;;  %782 = vrot.lane.b32.xlu0 %v731_v20, %s3274_s1  ;;  %v657_v26 = vsel %vm640_vm14, %v3012_v9, %v649_v17  ;;  %v3099_v9 = vpop.permute.xlu0 %3098  ;;  %vm1304_vm14 = vcmask 64512  }
 0x1e6   :  { %v658_v25 = vsel %vm641_vm15, %v3013_v13, %v650_v21  ;;  %842 = vrot.lane.b32.xlu1 %v767_v22, %s3275_s18 }
 0x1e7   :  { %v3611_v27 = vpack.c.bf16 %v658_v25, %v656_v24  ;;  %v659_v28 = vsel %vm642_vm9, %v3014_v19, %v651_v23 }
 0x1e8   :  { %v3613_v32 = vpack.c.bf16 %v659_v28, %v657_v26 }
 0x1e9   :  { %v735_v35 = vmul.bf16 %v3611_v27, %v3423_v30  ;;  %v771_v38 = vmul.bf16 %v3611_v27, %v3442_v39  ;;  %v1039_v39 = vld [vmem:[%s4358_s4 + $0x8] sm:$0xff] }
 0x1ea   :  { %784 = vrot.lane.b32.xlu1 %v732_v33, %s3274_s1  ;;  %820 = vrot.lane.b32.xlu0 %v3613_v32, %s3273_s23  ;;  %v736_v34 = vmul.bf16 %v3613_v32, %v3426_v31  ;;  %v772_v30 = vmul.bf16 %v3613_v32, %v3453_v45  ;;  %v1038_v31 = vld [vmem:[%s4358_s4] sm:$0xff]  ;;  %v1040_v45 = vld [vmem:[%s4358_s4 + $0x10] sm:$0xff] }
 0x1ee   :  { %818 = vrot.lane.b32.xlu1 %v3611_v27, %s3273_s23  ;;  %790 = vrot.lane.b32.xlu0 %v736_v34, %s3274_s1 }
 0x1f2   :  { %788 = vrot.lane.b32.xlu1 %v735_v35, %s3274_s1  ;;  %844 = vrot.lane.b32.xlu0 %v768_v37, %s3275_s18 }
 0x1f6   :  { %840 = vrot.lane.b32.xlu1 %v3456_v46, %s3275_s18  ;;  %848 = vrot.lane.b32.xlu0 %v771_v38, %s3275_s18 }
 0x1fa   :  { %866 = vrot.lane.b32.xlu1 %v731_v20, %s3276_s3  ;;  %846 = vrot.lane.b32.xlu0 %v3456_v46, %s3275_s18  ;;  %v1041_v46 = vld [vmem:[%s4358_s4 + $0x18] sm:$0xff] }
 0x1fe   :  { %864 = vrot.lane.b32.xlu1 %v3420_v29, %s3276_s3  ;;  %868 = vrot.lane.b32.xlu0 %v732_v33, %s3276_s3 }
 0x202   :  { %850 = vrot.lane.b32.xlu1 %v772_v30, %s3275_s18  ;;  %872 = vrot.lane.b32.xlu0 %v735_v35, %s3276_s3 }
 0x206   :  { %896 = vrot.lane.b32.xlu1 %v768_v37, %s3277_s24  ;;  %870 = vrot.lane.b32.xlu0 %v3420_v29, %s3276_s3  ;;  %v3122_v29 = vld [vmem:[#allocation8 + $0x4] ss:$12 sps:$4 sm:$0xff]  }
 0x207   :  { %1130 = vmatprep.mubr.bf16.mxu1 %v3122_v29 }
 0x20a   :  { %874 = vrot.lane.b32.xlu1 %v736_v34, %s3276_s3  ;;  %898 = vrot.lane.b32.xlu0 %v3483_v54, %s3277_s24 }
 0x20e   :  { %894 = vrot.lane.b32.xlu1 %v767_v22, %s3277_s24  ;;  %900 = vrot.lane.b32.xlu0 %v771_v38, %s3277_s24 }
 0x212   :  { %904 = vrot.lane.b32.xlu1 %v3483_v54, %s3277_s24  ;;  %924 = vrot.lane.b32.xlu0 %v3494_v57, %s3278_s25 }
 0x216   :  { %922 = vrot.lane.b32.xlu1 %v732_v33, %s3278_s25  ;;  %902 = vrot.lane.b32.xlu0 %v772_v30, %s3277_s24 }
 0x21a   :  { %920 = vrot.lane.b32.xlu1 %v731_v20, %s3278_s25  ;;  %926 = vrot.lane.b32.xlu0 %v735_v35, %s3278_s25 }
 0x21e   :  { %930 = vrot.lane.b32.xlu1 %v3494_v57, %s3278_s25  ;;  %928 = vrot.lane.b32.xlu0 %v736_v34, %s3278_s25  ;;  %v2903_v57 = vld [vmem:[%s4354_s0 + $0x48] sm:$0xff] }
 0x21f   :  { %v3728_v53 = vpack.c.bf16 %v2905_v42, %v2903_v57  ;;  %v3101_v42 = vunpack.i.h.bf16 %v3099_v9 }
 0x222   :  { %948 = vrot.lane.b32.xlu1 %v3595_v4, %s3279_s26  ;;  %950 = vrot.lane.b32.xlu0 %v3272_v3, %s3279_s26 }
 0x226   :  { %946 = vrot.lane.b32.xlu1 %v3593_v36, %s3279_s26  ;;  %954 = vrot.lane.b32.xlu0 %v3613_v32, %s3279_s26 }
 0x22a   :  { %956 = vrot.lane.b32.xlu1 %v3272_v3, %s3279_s26  ;;  %952 = vrot.lane.b32.xlu0 %v3611_v27, %s3279_s26 }
 0x22e   :  { %972 = vrot.lane.b32.xlu1 %v768_v37, %s3280_s27  ;;  %974 = vrot.lane.b32.xlu0 %v3483_v54, %s3280_s27 }
 0x232   :  { %970 = vrot.lane.b32.xlu1 %v767_v22, %s3280_s27  ;;  %978 = vrot.lane.b32.xlu0 %v772_v30, %s3280_s27 }
 0x236   :  { %980 = vrot.lane.b32.xlu1 %v3483_v54, %s3280_s27  ;;  %976 = vrot.lane.b32.xlu0 %v771_v38, %s3280_s27  ;;  %v2910_v54 = vld.sshfl [vmem:[%s4363_s9] sm:$0x33 pattern:$0x75316420] }
 0x237   :  { %v3704_v40 = vrot.slane %v2910_v54, %v3374_v6  ;;  %v1504_v41 = vcombine.high %v2910_v54, %v2910_v54 }
 0x239   :  { %v1519_v47 = vcombine.high %v3704_v40, %v3704_v40  ;;  %v1522_v49 = vpack.i.b16 %v3704_v40, %v3704_v40  ;;  %v3720_v50 = vrot.slane %v1504_v41, %v3374_v6 }
 0x23a   :  { %1044 = vperm.xlu1 %3095, %v1038_v31   ;;  %1049 = vperm.xlu0 %3096, %v1039_v39   ;;  %v3100_v39 = vunpack.i.l.bf16 %v3099_v9 }
 0x23b   :  { %v1536_v55 = vpack.i.b16 %v1519_v47, %v1519_v47  ;;  %v1529_v58 = vpack.i.b16 %v3720_v50, %v3720_v50  ;;  %v1527_v6 = vrot.slane %v1522_v49, %v3406_v18  ;;  %v1564_v8 = vshrl.u32 %v3720_v50, 16 }
 0x23c   :  { %v1571_v12 = vshrl.u32 %v1519_v47, 16 }
 0x23d   :  { %v3735_v59 = vrot.slane %v1536_v55, %v3406_v18  ;;  %v3739_v60 = vrot.slane %v1529_v58, %v3406_v18  ;;  %v3759_v2 = vmul.bf16 0, %v1527_v6  ;;  %v1565_v13 = vpack.i.b16 %v1564_v8, %v1564_v8 }
 0x23e   :  { %1054 = vperm.xlu1 %3095, %v1040_v45   ;;  %1059 = vperm.xlu0 %3096, %v1041_v46   ;;  %v1572_v19 = vpack.i.b16 %v1571_v12, %v1571_v12 }
 0x23f   :  { %v3751_v10 = vmul.bf16 %v3735_v59, %v3728_v53  ;;  %v3755_v1 = vmul.bf16 %v3739_v60, %v3730_v56  ;;  %v3767_v5 = vmul.bf16 %v3739_v60, %v3741_v62  ;;  %v3773_v7 = vmul.bf16 %v3735_v59, %v3763_v16 }
 0x240   :  { %v3787_v20 = vrot.slane %v1565_v13, %v3406_v18  ;;  %v3794_v23 = vrot.slane %v1572_v19, %v3406_v18 }
 0x242   :  { %1603 = vrot.lane.b32.xlu1 %v3751_v10, %s3274_s1  ;;  %1601 = vrot.lane.b32.xlu0 %v3755_v1, %s3274_s1  ;;  %v3798_v24 = vmul.bf16 %v3787_v20, %v3730_v56  ;;  %v3804_v28 = vmul.bf16 %v3794_v23, %v3728_v53 }
 0x246   :  { %1599 = vrot.lane.b32.xlu1 %v3759_v2, %s3274_s1  ;;  %1607 = vrot.lane.b32.xlu0 %v3767_v5, %s3274_s1 }
 0x24a   :  { %1609 = vrot.lane.b32.xlu1 %v3773_v7, %s3274_s1  ;;  %1605 = vrot.lane.b32.xlu0 %v3759_v2, %s3274_s1 }
 0x24e   :  { %1631 = vrot.lane.b32.xlu1 %v3730_v56, %s3273_s23  ;;  %1633 = vrot.lane.b32.xlu0 %v3728_v53, %s3273_s23 }
 0x252   :  { %3103 = vrot.lane.b32.xlu1 %v3272_v3, %s3273_s23  ;;  %1637 = vrot.lane.b32.xlu0 %v3741_v62, %s3273_s23 }
 0x253   :  { %v813_v15 = vpop.permute.xlu0 %812 }
 0x254   :  { %v815_v17 = vpop.permute.xlu1 %814  ;;  %v822_v57 = vsel %vm245_vm1, %v3100_v39, %v813_v15 }
 0x255   :  { %v823_v45 = vsel %vm245_vm1, %v813_v15, %v815_v17 }
 0x256   :  { %1639 = vrot.lane.b32.xlu1 %v3763_v16, %s3273_s23  ;;  %1661 = vrot.lane.b32.xlu0 %v3798_v24, %s3275_s18 }
 0x257   :  { %v783_v21 = vpop.permute.xlu0 %782 }
 0x258   :  { %v843_v22 = vpop.permute.xlu1 %842  ;;  %v792_v34 = vsel %vm214_vm0, %v781_v14, %v783_v21 }
 0x25a   :  { %1663 = vrot.lane.b32.xlu1 %v3804_v28, %s3275_s18 }
 0x25c   :  { %v785_v25 = vpop.permute.xlu1 %784  ;;  %v821_v26 = vpop.permute.xlu0 %820 }
 0x25d   :  { %v793_v33 = vsel %vm214_vm0, %v783_v21, %v785_v25 }
 0x25e   :  { %1098 = vmatprep.subr.bf16.mxu1 %v793_v33 }
 0x25f   :  { %1099 = vmatpush1.bf16.msra.mxu1 %v792_v34 }
 0x260   :  { %v819_v35 = vpop.permute.xlu1 %818  ;;  %v791_v37 = vpop.permute.xlu0 %790 }
 0x261   :  { %v825_v41 = vsel %vm245_vm1, %v819_v35, %v821_v26  ;;  %v824_v47 = vsel %vm245_vm1, %v3101_v42, %v819_v35 }
 0x264   :  { %v789_v38 = vpop.permute.xlu1 %788  ;;  %v845_v30 = vpop.permute.xlu0 %844 }
 0x265   :  { %v795_v29 = vsel %vm214_vm0, %v789_v38, %v791_v37  ;;  %v794_v31 = vsel %vm214_vm0, %v787_v11, %v789_v38  ;;  %v853_v49 = vsel %vm276_vm2, %v843_v22, %v845_v30 }
 0x266   :  { %1100 = vmatprep.subr.bf16.mxu1 %v795_v29 }
 0x267   :  { %1101 = vmatpush1.bf16.msra.mxu1 %v794_v31 }
 0x268   :  { %v841_v46 = vpop.permute.xlu1 %840  ;;  %1102 = vmatprep.subr.bf16.mxu1 %v823_v45  ;;  %v849_v54 = vpop.permute.xlu0 %848 }
 0x269   :  { %v852_v55 = vsel %vm276_vm2, %v841_v46, %v843_v22 }
 0x26b   :  { %1103 = vmatpush1.bf16.msra.mxu1 %v822_v57 }
 0x26c   :  { %v867_v43 = vpop.permute.xlu1 %866  ;;  %v847_v44 = vpop.permute.xlu0 %846  ;;  %1104 = vmatprep.subr.bf16.mxu1 %v825_v41 }
 0x26d   :  { %v854_v0 = vsel %vm276_vm2, %v847_v44, %v849_v54 }
 0x26f   :  { %1105 = vmatpush1.bf16.msra.mxu1 %v824_v47 }
 0x270   :  { %v865_v51 = vpop.permute.xlu1 %864  ;;  %v869_v52 = vpop.permute.xlu0 %868  ;;  %1106 = vmatprep.subr.bf16.mxu1 %v853_v49 }
 0x271   :  { %v877_v14 = vsel %vm301_vm3, %v867_v43, %v869_v52  ;;  %v876_v11 = vsel %vm301_vm3, %v865_v51, %v867_v43  ;;  %v3120_v51 = vld [vmem:[#allocation8] ss:$12 sps:$4 sm:$0xff]   ;;  %v3123_v52 = vld [vmem:[#allocation8 + $0x1c] ss:$12 sps:$4 sm:$0xff]  }
 0x273   :  { %1107 = vmatpush1.bf16.msra.mxu1 %v852_v55 }
 0x274   :  { %v851_v58 = vpop.permute.xlu1 %850  ;;  %v873_v6 = vpop.permute.xlu0 %872 }
 0x275   :  { %v855_v63 = vsel %vm276_vm2, %v849_v54, %v851_v58 }
 0x276   :  { %1108 = vmatprep.subr.bf16.mxu1 %v855_v63 }
 0x277   :  { %1109 = vmatpush1.bf16.msra.mxu1 %v854_v0 }
 0x278   :  { %v897_v8 = vpop.permute.xlu1 %896  ;;  %v871_v9 = vpop.permute.xlu0 %870  ;;  %1110 = vmatprep.subr.bf16.mxu1 %v877_v14 }
 0x279   :  { %v878_v17 = vsel %vm301_vm3, %v871_v9, %v873_v6 }
 0x27b   :  { %1111 = vmatpush1.bf16.msra.mxu1 %v876_v11 }
 0x27c   :  { %v875_v12 = vpop.permute.xlu1 %874  ;;  %v899_v13 = vpop.permute.xlu0 %898 }
 0x27d   :  { %v879_v15 = vsel %vm301_vm3, %v873_v6, %v875_v12  ;;  %v907_v26 = vsel %vm332_vm4, %v897_v8, %v899_v13 }
 0x27e   :  { %1112 = vmatprep.subr.bf16.mxu1 %v879_v15  ;;  %v3126_v15 = vld [vmem:[#allocation8 + $0x8] ss:$12 sps:$4 sm:$0xff]  }
 0x27f   :  { %1113 = vmatpush1.bf16.msra.mxu1 %v878_v17  ;;  %v3127_v17 = vld [vmem:[#allocation8 + $0x20] ss:$12 sps:$4 sm:$0xff]  }
 0x280   :  { %v895_v19 = vpop.permute.xlu1 %894  ;;  %v901_v21 = vpop.permute.xlu0 %900  ;;  %1114 = vmatprep.subr.bf16.mxu1 %v3595_v4 }
 0x281   :  { %v906_v35 = vsel %vm332_vm4, %v895_v19, %v897_v8  ;;  %v3125_v8 = vld [vmem:[#allocation8 + $0x18] ss:$12 sps:$4 sm:$0xff]  }
 0x283   :  { %1115 = vmatpush1.bf16.msra.mxu1 %v3593_v36 }
 0x284   :  { %v905_v22 = vpop.permute.xlu1 %904  ;;  %v925_v25 = vpop.permute.xlu0 %924  ;;  %1116 = vmatprep.subr.bf16.mxu1 %v3613_v32 }
 0x287   :  { %1117 = vmatpush1.bf16.msra.mxu1 %v3611_v27 }
 0x288   :  { %v923_v33 = vpop.permute.xlu1 %922  ;;  %v903_v34 = vpop.permute.xlu0 %902  ;;  %1118 = vmatprep.subr.bf16.mxu1 %v907_v26 }
 0x289   :  { %v909_v37 = vsel %vm332_vm4, %v903_v34, %v905_v22  ;;  %v908_v36 = vsel %vm332_vm4, %v901_v21, %v903_v34  ;;  %v933_v32 = vsel %vm359_vm5, %v923_v33, %v925_v25 }
 0x28b   :  { %1119 = vmatpush1.bf16.msra.mxu1 %v906_v35 }
 0x28c   :  { %v921_v38 = vpop.permute.xlu1 %920  ;;  %v927_v4 = vpop.permute.xlu0 %926  ;;  %1120 = vmatprep.subr.bf16.mxu1 %v909_v37 }
 0x28d   :  { %v932_v29 = vsel %vm359_vm5, %v921_v38, %v923_v33 }
 0x28f   :  { %1121 = vmatpush1.bf16.msra.mxu1 %v908_v36 }
 0x290   :  { %v931_v30 = vpop.permute.xlu1 %930  ;;  %v929_v27 = vpop.permute.xlu0 %928  ;;  %1122 = vmatprep.subr.bf16.mxu1 %v933_v32 }
 0x291   :  { %v935_v31 = vsel %vm359_vm5, %v929_v27, %v931_v30  ;;  %v934_v46 = vsel %vm359_vm5, %v927_v4, %v929_v27 }
 0x293   :  { %1123 = vmatpush1.bf16.msra.mxu1 %v932_v29 }
 0x294   :  { %v949_v39 = vpop.permute.xlu1 %948  ;;  %v951_v45 = vpop.permute.xlu0 %950  ;;  %1124 = vmatprep.subr.bf16.mxu1 %v935_v31 }
 0x295   :  { %v959_v54 = vsel %vm386_vm6, %v949_v39, %v951_v45 }
 0x297   :  { %1125 = vmatpush1.bf16.msra.mxu1 %v934_v46 }
 0x298   :  { %v947_v57 = vpop.permute.xlu1 %946  ;;  %v955_v41 = vpop.permute.xlu0 %954  ;;  %1126 = vmatprep.subr.bf16.mxu1 %v959_v54  ;;  %v3870_v54 = vmul.bf16 %v3787_v20, %v3741_v62 }
 0x299   :  { %v958_v42 = vsel %vm386_vm6, %v947_v57, %v949_v39  ;;  %v1557_v57 = vshrl.u32 %v3704_v40, 16  ;;  %v1520_v40 = vcombine.high %v3720_v50, %v3720_v50 }
 0x29b   :  { %1127 = vmatpush1.bf16.msra.mxu1 %v958_v42  ;;  %v3281_v42 = vmov 0.0|0.0  }
 0x29c   :  { %v957_v43 = vpop.permute.xlu1 %956  ;;  %v953_v44 = vpop.permute.xlu0 %952  ;;  %2995 = vmatprep.subr.bf16.mxu0 %v3281_v42 }
 0x29d   :  { %v961_v47 = vsel %vm386_vm6, %v955_v41, %v957_v43  ;;  %v960_v49 = vsel %vm386_vm6, %v953_v44, %v955_v41  ;;  %v1558_v41 = vpack.i.b16 %v1557_v57, %v1557_v57 }
 0x29e   :  { %1128 = vmatprep.subr.bf16.mxu1 %v961_v47  ;;  %v1591_v47 = vmul.bf16 %v3794_v23, %v3763_v16 }
 0x29f   :  { %1129 = vmatpush1.bf16.msra.mxu1 %v960_v49  ;;  %v1563_v43 = vrot.slane %v1558_v41, %v3406_v18  ;;  %v1578_v49 = vshrl.u32 %v1520_v40, 16 }
 0x2a0   :  { %v973_v55 = vpop.permute.xlu1 %972  ;;  %v975_v58 = vpop.permute.xlu0 %974 }
 0x2a1   :  { %v983_v6 = vsel %vm411_vm7, %v973_v55, %v975_v58  ;;  %v3877_v44 = vmul.bf16 0, %v1563_v43 }
 0x2a2   :  { %1131 = vmatmul.mubr.bf16.vlgmr.msra.gmra.mrb[0].mxu1 %v3120_v51  ;;  %1151 = vmatprep.subr.bf16.mxu1 %v983_v6 }
 0x2a3   :  { %1140 = vmatprep.mubr.bf16.mxu1 %v3123_v52  ;;  %v1579_v52 = vpack.i.b16 %v1578_v49, %v1578_v49 }
 0x2a4   :  { %v971_v63 = vpop.permute.xlu1 %970  ;;  %v979_v0 = vpop.permute.xlu0 %978 }
 0x2a5   :  { %v982_v14 = vsel %vm411_vm7, %v971_v63, %v973_v55  ;;  %v1584_v6 = vrot.slane %v1579_v52, %v3406_v18  ;;  %v3981_v52 = vld [vmem:[%s4359_s5] sm:$0xff] }
 0x2a6   :  { %1152 = vmatpush1.bf16.msra.mxu1 %v982_v14 }
 0x2a7   :  { %v3903_v63 = vmul.bf16 0, %v1584_v6  ;;  %v3130_v6 = vld [vmem:[#allocation5 + $0x4] ss:$12 sps:$4 sm:$0xff]  }
 0x2a8   :  { %v981_v9 = vpop.permute.xlu1 %980  ;;  %v977_v11 = vpop.permute.xlu0 %976 }
 0x2a9   :  { %v984_v12 = vsel %vm411_vm7, %v977_v11, %v979_v0  ;;  %v985_v13 = vsel %vm411_vm7, %v979_v0, %v981_v9  ;;  %v1543_v0 = vpack.i.b16 %v1520_v40, %v1520_v40  ;;  %v3283_v9 = vmov 0.0  }
 0x2aa   :  { %1141 = vmatmul.mubr.bf16.gmra.mrb[4].mxu1 %v3125_v8  ;;  %1153 = vmatprep.subr.bf16.mxu1 %v985_v13 }
 0x2ab   :  { %1154 = vmatpush1.bf16.msra.mxu1 %v984_v12  ;;  %1183 = vmatprep.mubr.bf16.mxu1 %v3272_v3  ;;  %v1548_v14 = vrot.slane %v1543_v0, %v3406_v18  ;;  %v3176_v18 = vld [vmem:[%s4356_s2] sm:$0xff] }
 0x2ac   :  { %2965 = vmatprep.mubr.msk.f32.mxu0 %vm3282_vm10, %v3283_v9 }
 0x2ad   :  { %v3912_v8 = vmul.bf16 0, %v1548_v14 }
 0x2b2   :  { %2891 = vmatmul.mubr.msk.bf16.vlgmr.msra.gmra.mrb[0].mxu1 %vm522_vm8, %v3126_v15  ;;  %v3177_v15 = vld [vmem:[%s4356_s2 + $0x8] sm:$0xff] }
 0x2b3   :  { %1193 = vmatprep.mubr.bf16.mxu1 %v3272_v3 }
 0x2b9   :  { %v1045_v19 = vpop.permute.xlu1 %1044  ;;  %v1050_v26 = vpop.permute.xlu0 %1049 }
 0x2ba   :  { %2892 = vmatmul.mubr.msk.bf16.gmra.mrb[4].mxu1 %vm522_vm8, %v3127_v17 }
 0x2bd   :  { %v1055_v32 = vpop.permute.xlu1 %1054  ;;  %v1060_v51 = vpop.permute.xlu0 %1059 }
 0x385   :  { %v1185_v21 = vpop.f32.mrb[0].mxu1 }
 0x386   :  { %v3850_v22 = vadd.f32 %v1185_v21, %v1045_v19  ;;  %v1187_v25 = vpop.f32.mrb[1].mxu1  ;;  %v3178_v21 = vld [vmem:[%s4356_s2 + $0x18] sm:$0xff] }
 0x387   :  { %v3852_v33 = vadd.f32 %v1187_v25, %v1045_v19  ;;  %v1189_v34 = vpop.f32.mrb[2].mxu1 }
 0x388   :  { %v3854_v35 = vadd.f32 %v1189_v34, %v1050_v26  ;;  %v1191_v37 = vpop.f32.mrb[3].mxu1 }
 0x389   :  { %v1204_v38 = vadd.f32 %v3852_v33, %v3850_v22  ;;  %v3858_v4 = vadd.f32 %v1191_v37, %v1050_v26 }
 0x38b   :  { %v1207_v36 = vadd.f32 %v3858_v4, %v3854_v35  ;;  %1205 = vadd.xlane.f32.xlu1 %v1204_v38 }
 0x38d   :  { %v1195_v30 = vpop.f32.mrb[4].mxu1  ;;  %1208 = vadd.xlane.f32.xlu0 %v1207_v36 }
 0x38e   :  { %v3862_v27 = vadd.f32 %v1195_v30, %v1055_v32  ;;  %v1197_v29 = vpop.f32.mrb[5].mxu1 }
 0x38f   :  { %v3864_v31 = vadd.f32 %v1197_v29, %v1055_v32  ;;  %v1199_v39 = vpop.f32.mrb[6].mxu1 }
 0x390   :  { %v1201_v45 = vpop.f32.mrb[7].mxu1  ;;  %v3892_v55 = vadd.f32 %v1199_v39, %v1060_v51 }
 0x391   :  { %v1210_v46 = vadd.f32 %v3864_v31, %v3862_v27  ;;  %v3894_v58 = vadd.f32 %v1201_v45, %v1060_v51 }
 0x393   :  { %1211 = vadd.xlane.f32.xlu0 %v1210_v46  ;;  %v1213_v50 = vadd.f32 %v3894_v58, %v3892_v55 }
 0x39c   :  { %1667 = vrot.lane.b32.xlu1 %v3870_v54, %s3275_s18 }
 0x3a9   :  { %1659 = vrot.lane.b32.xlu0 %v3877_v44, %s3275_s18 }
 0x3ad   :  { %1669 = vrot.lane.b32.xlu0 %v1591_v47, %s3275_s18 }
 0x3b1   :  { %1685 = vrot.lane.b32.xlu0 %v3755_v1, %s3276_s3 }
 0x3b5   :  { %1683 = vrot.lane.b32.xlu0 %v3759_v2, %s3276_s3 }
 0x3b9   :  { %1693 = vrot.lane.b32.xlu0 %v3773_v7, %s3276_s3 }
 0x3bd   :  { %1715 = vrot.lane.b32.xlu0 %v3804_v28, %s3277_s24 }
 0x3c0   :  { %1214 = vadd.xlane.f32.xlu1 %v1213_v50 }
 0x3c1   :  { %1713 = vrot.lane.b32.xlu0 %v3798_v24, %s3277_s24 }
 0x3c5   :  { %1723 = vrot.lane.b32.xlu0 %v3903_v63, %s3277_s24 }
 0x3c9   :  { %1741 = vrot.lane.b32.xlu0 %v3751_v10, %s3278_s25 }
 0x3cd   :  { %1739 = vrot.lane.b32.xlu0 %v3755_v1, %s3278_s25 }
 0x3d1   :  { %1749 = vrot.lane.b32.xlu0 %v3912_v8, %s3278_s25  ;;  %1665 = vrot.lane.b32.xlu1 %v3877_v44, %s3275_s18 }
 0x3d5   :  { %1767 = vrot.lane.b32.xlu0 %v3728_v53, %s3279_s26  ;;  %1687 = vrot.lane.b32.xlu1 %v3751_v10, %s3276_s3  ;;  %v1604_v10 = vpop.permute.xlu1 %1603 }
 0x3d9   :  { %1765 = vrot.lane.b32.xlu0 %v3730_v56, %s3279_s26  ;;  %1691 = vrot.lane.b32.xlu1 %v3767_v5, %s3276_s3  ;;  %v1600_v1 = vpop.permute.xlu1 %1599 }
 0x3dd   :  { %1775 = vrot.lane.b32.xlu0 %v3272_v3, %s3279_s26  ;;  %1689 = vrot.lane.b32.xlu1 %v3759_v2, %s3276_s3 }
 0x3e1   :  { %1791 = vrot.lane.b32.xlu0 %v3804_v28, %s3280_s27  ;;  %1717 = vrot.lane.b32.xlu1 %v3903_v63, %s3277_s24  ;;  %v1610_v28 = vpop.permute.xlu1 %1609 }
 0x3e5   :  { %1789 = vrot.lane.b32.xlu0 %v3798_v24, %s3280_s27  ;;  %1721 = vrot.lane.b32.xlu1 %v1591_v47, %s3277_s24  ;;  %v1602_v24 = vpop.permute.xlu0 %1601 }
 0x3e6   :  { %v1612_v51 = vsel %vm214_vm0, %v1602_v24, %v1604_v10  ;;  %v1611_v0 = vsel %vm214_vm0, %v1600_v1, %v1602_v24 }
 0x3e9   :  { %1799 = vrot.lane.b32.xlu0 %v3903_v63, %s3280_s27  ;;  %1719 = vrot.lane.b32.xlu1 %v3870_v54, %s3277_s24 }
 0x3ed   :  { %1863 = vperm.xlu0 %3096, %v3176_v18   ;;  %1743 = vrot.lane.b32.xlu1 %v3912_v8, %s3278_s25 }
 0x3f1   :  { %1873 = vperm.xlu0 %3096, %v3532_v61   ;;  %1747 = vrot.lane.b32.xlu1 %v3773_v7, %s3278_s25  ;;  %v1608_v61 = vpop.permute.xlu0 %1607  ;;  %v1632_v7 = vpop.permute.xlu1 %1631 }
 0x3f2   :  { %v1614_v14 = vsel %vm214_vm0, %v1608_v61, %v1610_v28 }
 0x3f5   :  { %1745 = vrot.lane.b32.xlu1 %v3767_v5, %s3278_s25  ;;  %2167 = vrot.lane.b32.xlu0 %v3759_v2, %s3274_s1  ;;  %v1606_v5 = vpop.permute.xlu0 %1605  ;;  %v3104_v11 = vpop.permute.xlu1 %3103 }
 0x3f6   :  { %v1613_v10 = vsel %vm214_vm0, %v1606_v5, %v1608_v61 }
 0x3f9   :  { %1769 = vrot.lane.b32.xlu1 %v3272_v3, %s3279_s26  ;;  %v1634_v12 = vpop.permute.xlu0 %1633  ;;  %v1640_v13 = vpop.permute.xlu1 %1639  ;;  %3108 = vrot.lane.b32.xlu0 %v3272_v3, %s3273_s23 }
 0x3fd   :  { %1773 = vrot.lane.b32.xlu1 %v3763_v16, %s3279_s26  ;;  %v1638_v17 = vpop.permute.xlu0 %1637  ;;  %v1664_v19 = vpop.permute.xlu1 %1663 }
 0x3fe   :  { %v1644_v1 = vsel %vm245_vm1, %v1638_v17, %v1640_v13 }
 0x401   :  { %1771 = vrot.lane.b32.xlu1 %v3741_v62, %s3279_s26  ;;  %v1662_v25 = vpop.permute.xlu0 %1661 }
 0x402   :  { %v1672_v61 = vsel %vm276_vm2, %v1662_v25, %v1664_v19 }
 0x405   :  { %1793 = vrot.lane.b32.xlu1 %v3903_v63, %s3280_s27 }
 0x409   :  { %1797 = vrot.lane.b32.xlu1 %v1591_v47, %s3280_s27 }
 0x40d   :  { %1795 = vrot.lane.b32.xlu1 %v3870_v54, %s3280_s27 }
 0x411   :  { %1868 = vperm.xlu1 %3095, %v3177_v15   ;;  %v3105_v15 = vunpack.i.l.bf16 %v3104_v11 }
 0x415   :  { %1878 = vperm.xlu1 %3095, %v3178_v21  }
 0x418   :  { %v1206_v26 = vpop.xlane.xlu1 %1205 }
 0x419   :  { %2173 = vrot.lane.b32.xlu1 %v3759_v2, %s3274_s1  ;;  %v1216_v37 = vmul.f32 0.00390625, %v1206_v26  ;;  %v1642_v26 = vsel %vm245_vm1, %v1632_v7, %v1634_v12 }
 0x41a   :  { %v1209_v34 = vpop.xlane.xlu0 %1208 }
 0x41b   :  { %v1217_v38 = vmul.f32 0.00390625, %v1209_v34  ;;  %v3106_v34 = vunpack.i.h.bf16 %v3104_v11 }
 0x41c   :  { %v1668_v46 = vpop.permute.xlu1 %1667 }
 0x41d   :  { %v2996_v36 = vpack.c.bf16 %v1217_v38, %v1216_v37  ;;  %v1643_v28 = vsel %vm245_vm1, %v3106_v34, %v1638_v17 }
 0x41f   :  { %2997 = vmatpush3.bf16.msra.mxu0 %v2996_v36  ;;  %v1641_v36 = vsel %vm245_vm1, %v3105_v15, %v1632_v7 }
 0x420   :  { %2998 = vmatprep.subr.bf16.mxu0 %v3281_v42  ;;  %v1212_v32 = vpop.xlane.xlu0 %1211 }
 0x421   :  { %v1218_v41 = vmul.f32 0.00390625, %v1212_v32 }
 0x424   :  { %v1660_v30 = vpop.permute.xlu0 %1659 }
 0x425   :  { %v1671_v12 = vsel %vm276_vm2, %v1660_v30, %v1662_v25 }
 0x428   :  { %v1670_v29 = vpop.permute.xlu0 %1669 }
 0x429   :  { %v1674_v11 = vsel %vm276_vm2, %v1668_v46, %v1670_v29 }
 0x42c   :  { %v1686_v39 = vpop.permute.xlu0 %1685 }
 0x430   :  { %v1684_v45 = vpop.permute.xlu0 %1683 }
 0x431   :  { %v1695_v17 = vsel %vm301_vm3, %v1684_v45, %v1686_v39 }
 0x434   :  { %v1694_v54 = vpop.permute.xlu0 %1693 }
 0x438   :  { %v3975_v40 = vpop.permute.xlu0 %1715 }
 0x43c   :  { %v1714_v18 = vpop.permute.xlu0 %1713 }
 0x440   :  { %v1724_v37 = vpop.permute.xlu0 %1723 }
 0x444   :  { %v1742_v5 = vpop.permute.xlu0 %1741 }
 0x448   :  { %v1740_v7 = vpop.permute.xlu0 %1739 }
 0x44c   :  { %v1750_v25 = vpop.permute.xlu0 %1749 }
 0x44d   :  { %v1215_v57 = vpop.xlane.xlu1 %1214 }
 0x44e   :  { %v1219_v43 = vmul.f32 0.00390625, %v1215_v57 }
 0x450   :  { %v2999_v47 = vpack.c.bf16 %v1219_v43, %v1218_v41 }
 0x451   :  { %v1666_v49 = vpop.permute.xlu1 %1665 }
 0x452   :  { %3000 = vmatpush3.bf16.msra.mxu0 %v2999_v47  ;;  %v1673_v57 = vsel %vm276_vm2, %v1666_v49, %v1668_v46  ;;  %v1768_v46 = vpop.permute.xlu0 %1767 }
 0x453   :  { %1917 = vmatprep.subr.bf16.mxu0 %v1612_v51 }
 0x455   :  { %2966 = vmatmul.mubr.msk.f32.vlgmr.msra.gmra.mrb[8].mxu0 %vm522_vm8, %v3981_v52  ;;  %v1688_v50 = vpop.permute.xlu1 %1687 }
 0x456   :  { %1918 = vmatpush1.bf16.msra.mxu0 %v1611_v0  ;;  %1949 = vmatprep.mubr.bf16.mxu0 %v3130_v6  ;;  %v1696_v41 = vsel %vm301_vm3, %v1686_v39, %v1688_v50  ;;  %v1766_v45 = vpop.permute.xlu0 %1765  ;;  %v1751_v50 = vsel %vm359_vm5, %v1740_v7, %v1742_v5  ;;  %v3135_v7 = vld [vmem:[#allocation5 + $0x20] ss:$12 sps:$4 sm:$0xff]  }
 0x457   :  { %1919 = vmatprep.subr.bf16.mxu0 %v1614_v14 }
 0x459   :  { %v1692_v21 = vpop.permute.xlu1 %1691 }
 0x45a   :  { %1920 = vmatpush1.bf16.msra.mxu0 %v1613_v10  ;;  %v1698_v43 = vsel %vm301_vm3, %v1692_v21, %v1694_v54  ;;  %v1725_v54 = vsel %vm332_vm4, %v1714_v18, %v3975_v40  ;;  %v1776_v6 = vpop.permute.xlu0 %1775 }
 0x45b   :  { %1921 = vmatprep.subr.bf16.mxu0 %v1642_v26 }
 0x45d   :  { %v1690_v38 = vpop.permute.xlu1 %1689 }
 0x45e   :  { %1922 = vmatpush1.bf16.msra.mxu0 %v1641_v36  ;;  %v1697_v30 = vsel %vm301_vm3, %v1690_v38, %v1692_v21  ;;  %v1792_v14 = vpop.permute.xlu0 %1791  ;;  %v1777_v21 = vsel %vm386_vm6, %v1766_v45, %v1768_v46  ;;  %v3128_v36 = vld [vmem:[#allocation5] ss:$12 sps:$4 sm:$0xff]  }
 0x45f   :  { %1923 = vmatprep.subr.bf16.mxu0 %v1644_v1  ;;  %v3131_v1 = vld [vmem:[#allocation5 + $0x1c] ss:$12 sps:$4 sm:$0xff]  }
 0x461   :  { %v1718_v24 = vpop.permute.xlu1 %1717 }
 0x462   :  { %1924 = vmatpush1.bf16.msra.mxu0 %v1643_v28  ;;  %v1726_v39 = vsel %vm332_vm4, %v3975_v40, %v1718_v24  ;;  %v1790_v26 = vpop.permute.xlu0 %1789 }
 0x463   :  { %1925 = vmatprep.subr.bf16.mxu0 %v1672_v61  ;;  %v1801_v24 = vsel %vm411_vm7, %v1790_v26, %v1792_v14 }
 0x465   :  { %v1722_v32 = vpop.permute.xlu1 %1721 }
 0x466   :  { %1926 = vmatpush1.bf16.msra.mxu0 %v1671_v12  ;;  %v1800_v28 = vpop.permute.xlu0 %1799 }
 0x467   :  { %1927 = vmatprep.subr.bf16.mxu0 %v1674_v11  ;;  %v3134_v11 = vld [vmem:[#allocation5 + $0x8] ss:$12 sps:$4 sm:$0xff]  }
 0x469   :  { %v1720_v13 = vpop.permute.xlu1 %1719 }
 0x46a   :  { %1928 = vmatpush1.bf16.msra.mxu0 %v1673_v57  ;;  %v4034_v57 = vld [vmem:[%s4360_s6] sm:$0xff] }
 0x46b   :  { %1929 = vmatprep.subr.bf16.mxu0 %v1696_v41 }
 0x46d   :  { %v1744_v19 = vpop.permute.xlu1 %1743 }
 0x46e   :  { %1930 = vmatpush1.bf16.msra.mxu0 %v1695_v17 }
 0x46f   :  { %1931 = vmatprep.subr.bf16.mxu0 %v1698_v43  ;;  %v1864_v43 = vpop.permute.xlu0 %1863 }
 0x471   :  { %v1748_v29 = vpop.permute.xlu1 %1747 }
 0x472   :  { %1932 = vmatpush1.bf16.msra.mxu0 %v1697_v30  ;;  %v1754_v0 = vsel %vm359_vm5, %v1748_v29, %v1750_v25 }
 0x473   :  { %1933 = vmatprep.subr.bf16.mxu0 %v3728_v53  ;;  %v1728_v53 = vsel %vm332_vm4, %v1722_v32, %v1724_v37 }
 0x475   :  { %v1746_v47 = vpop.permute.xlu1 %1745 }
 0x476   :  { %1934 = vmatpush1.bf16.msra.mxu0 %v3730_v56  ;;  %v1727_v56 = vsel %vm332_vm4, %v1720_v13, %v1722_v32  ;;  %v1753_v40 = vsel %vm359_vm5, %v1746_v47, %v1748_v29  ;;  %v3133_v32 = vld [vmem:[#allocation5 + $0x18] ss:$12 sps:$4 sm:$0xff]  }
 0x477   :  { %1935 = vmatprep.subr.bf16.mxu0 %v3763_v16  ;;  %v1752_v16 = vsel %vm359_vm5, %v1742_v5, %v1744_v19 }
 0x479   :  { %v1770_v49 = vpop.permute.xlu1 %1769 }
 0x47a   :  { %1936 = vmatpush1.bf16.msra.mxu0 %v3741_v62  ;;  %v1778_v10 = vsel %vm386_vm6, %v1768_v46, %v1770_v49 }
 0x47b   :  { %1937 = vmatprep.subr.bf16.mxu0 %v1726_v39 }
 0x47d   :  { %v1774_v51 = vpop.permute.xlu1 %1773 }
 0x47e   :  { %1938 = vmatpush1.bf16.msra.mxu0 %v1725_v54  ;;  %v1780_v15 = vsel %vm386_vm6, %v1774_v51, %v1776_v6  ;;  %v4043_v6 = vld [vmem:[%s4361_s7] sm:$0xff] }
 0x47f   :  { %1939 = vmatprep.subr.bf16.mxu0 %v1728_v53  ;;  %2970 = vmatprep.mubr.msk.f32.mxu1 %vm1304_vm14, %v4043_v6 }
 0x481   :  { %v1772_v62 = vpop.permute.xlu1 %1771 }
 0x482   :  { %1940 = vmatpush1.bf16.msra.mxu0 %v1727_v56  ;;  %v1779_v38 = vsel %vm386_vm6, %v1772_v62, %v1774_v51 }
 0x483   :  { %1941 = vmatprep.subr.bf16.mxu0 %v1752_v16 }
 0x485   :  { %v1794_v18 = vpop.permute.xlu1 %1793 }
 0x486   :  { %1942 = vmatpush1.bf16.msra.mxu0 %v1751_v50  ;;  %v1802_v37 = vsel %vm411_vm7, %v1792_v14, %v1794_v18  ;;  %v4051_v50 = vld [vmem:[%s4361_s7 + $0x8] sm:$0xff] }
 0x487   :  { %1943 = vmatprep.subr.bf16.mxu0 %v1754_v0  ;;  %v1874_v0 = vpop.permute.xlu0 %1873 }
 0x489   :  { %v1798_v34 = vpop.permute.xlu1 %1797 }
 0x48a   :  { %1944 = vmatpush1.bf16.msra.mxu0 %v1753_v40  ;;  %v1804_v61 = vsel %vm411_vm7, %v1798_v34, %v1800_v28 }
 0x48b   :  { %1945 = vmatprep.subr.bf16.mxu0 %v1778_v10 }
 0x48d   :  { %v1796_v5 = vpop.permute.xlu1 %1795 }
 0x48e   :  { %1946 = vmatpush1.bf16.msra.mxu0 %v1777_v21  ;;  %v1803_v12 = vsel %vm411_vm7, %v1796_v5, %v1798_v34 }
 0x48f   :  { %1947 = vmatprep.subr.bf16.mxu0 %v1780_v15 }
 0x492   :  { %1948 = vmatpush1.bf16.msra.mxu0 %v1779_v38 }
 0x493   :  { %1970 = vmatprep.subr.bf16.mxu0 %v1802_v37 }
 0x495   :  { %1950 = vmatmul.mubr.bf16.vlgmr.msra.gmra.mrb[12].mxu0 %v3128_v36 }
 0x496   :  { %1971 = vmatpush1.bf16.msra.mxu0 %v1801_v24  ;;  %1959 = vmatprep.mubr.bf16.mxu0 %v3131_v1 }
 0x497   :  { %1972 = vmatprep.subr.bf16.mxu0 %v1804_v61 }
 0x49a   :  { %1973 = vmatpush1.bf16.msra.mxu0 %v1803_v12 }
 0x49b   :  { %3001 = vmatprep.subr.bf16.mxu0 %v3281_v42 }
 0x49d   :  { %1960 = vmatmul.mubr.bf16.gmra.mrb[16].mxu0 %v3133_v32 }
 0x49e   :  { %2002 = vmatprep.mubr.bf16.mxu0 %v3272_v3 }
 0x4a5   :  { %2917 = vmatmul.mubr.msk.bf16.vlgmr.msra.gmra.mrb[12].mxu0 %vm522_vm8, %v3134_v11 }
 0x4a6   :  { %2012 = vmatprep.mubr.bf16.mxu0 %v3272_v3 }
 0x4ad   :  { %2918 = vmatmul.mubr.msk.bf16.gmra.mrb[16].mxu0 %vm522_vm8, %v3135_v7 }
 0x4ae   :  { %2984 = vmatprep.mubr.msk.f32.mxu0 %vm3282_vm10, %v3283_v9  ;;  %v1869_v9 = vpop.permute.xlu1 %1868 }
 0x4b2   :  { %v1879_v34 = vpop.permute.xlu1 %1878 }
 0x528   :  { %v1291_v13 = vpop.f32.mrb[8].mxu0 }
 0x529   :  { %v1292_v41 = vadd.f32 %v1291_v13, %v4034_v57  ;;  %v2967_v17 = vpop.f32.mrb[9].mxu0 }
 0x52b   :  { %v1295_v19 = vmax.f32 %v1292_v41, 0.0 }
 0x52d   :  { %2968 = vmatprep.subr.mxu1 %v1295_v19 }
 0x52e   :  { %2969 = vmatpush3.msra.mxu1 %v1295_v19 }
 0x52f   :  { %2971 = vmatmul.mubr.msk.f32.vlgmr.msra.gmra.mrb[8].mxu1 %vm1304_vm14, %v4051_v50 }
 0x578   :  { %v2004_v25 = vpop.f32.mrb[12].mxu0 }
 0x579   :  { %v3023_v30 = vadd.f32 %v2004_v25, %v1864_v43  ;;  %v2006_v29 = vpop.f32.mrb[13].mxu0 }
 0x57a   :  { %v3024_v46 = vadd.f32 %v2006_v29, %v1864_v43  ;;  %v2008_v47 = vpop.f32.mrb[14].mxu0 }
 0x57b   :  { %v2031_v49 = vmul.f32 %v3023_v30, %v3587_v48  ;;  %v3025_v39 = vadd.f32 %v2008_v47, %v1869_v9  ;;  %v2010_v45 = vpop.f32.mrb[15].mxu0  ;;  %vm2023_vm11 = vcmp.ge.f32.partialorder %v3023_v30, 0.0 }
 0x57c   :  { %v2032_v54 = vmul.f32 %v3024_v46, %v3587_v48  ;;  %v3026_v51 = vadd.f32 %v2010_v45, %v1869_v9  ;;  %vm2024_vm12 = vcmp.ge.f32.partialorder %v3024_v46, 0.0 }
 0x57d   :  { %vm2025_vm13 = vcmp.ge.f32.partialorder %v3025_v39, 0.0  ;;  %v2033_v53 = vmul.f32 %v3025_v39, %v3587_v48  ;;  %v2039_v16 = vsel %vm2023_vm11, %v3023_v30, %v2031_v49  ;;  %v2174_v49 = vpop.permute.xlu1 %2173 }
 0x57e   :  { %vm2026_vm15 = vcmp.ge.f32.partialorder %v3026_v51, 0.0  ;;  %v2034_v56 = vmul.f32 %v3026_v51, %v3587_v48  ;;  %v2040_v14 = vsel %vm2024_vm12, %v3024_v46, %v2032_v54  ;;  %v2427_v46 = vld [vmem:[%s4358_s4 + $0x10] sm:$0xff] }
 0x57f   :  { %v2041_v62 = vsel %vm2025_vm13, %v3025_v39, %v2033_v53 }
 0x580   :  { %v4053_v40 = vpack.c.bf16 %v2041_v62, %v2039_v16  ;;  %v2042_v18 = vsel %vm2026_vm15, %v3026_v51, %v2034_v56  ;;  %v2014_v10 = vpop.f32.mrb[16].mxu0 }
 0x581   :  { %v4057_v15 = vpack.c.bf16 %v2042_v18, %v2040_v14  ;;  %v3027_v21 = vadd.f32 %v2014_v10, %v1874_v0  ;;  %v2016_v26 = vpop.f32.mrb[17].mxu0 }
 0x582   :  { %v3028_v37 = vadd.f32 %v2016_v26, %v1874_v0  ;;  %v2018_v38 = vpop.f32.mrb[18].mxu0  ;;  %2199 = vrot.lane.b32.xlu0 %v4053_v40, %s3273_s23  ;;  %v2118_v5 = vmul.bf16 %v4053_v40, %v3739_v60  ;;  %v2154_v32 = vmul.bf16 %v4053_v40, %v3787_v20 }
 0x583   :  { %v2035_v36 = vmul.f32 %v3027_v21, %v3587_v48  ;;  %v3029_v1 = vadd.f32 %v2018_v38, %v1879_v34  ;;  %v2020_v24 = vpop.f32.mrb[19].mxu0  ;;  %2201 = vrot.lane.b32.xlu1 %v4057_v15, %s3273_s23  ;;  %vm2027_vm9 = vcmp.ge.f32.partialorder %v3027_v21, 0.0  ;;  %v2119_v25 = vmul.bf16 %v4057_v15, %v3735_v59 }
 0x584   :  { %v2036_v28 = vmul.f32 %v3028_v37, %v3587_v48  ;;  %v3030_v61 = vadd.f32 %v2020_v24, %v1879_v34  ;;  %vm2028_vm10 = vcmp.ge.f32.partialorder %v3028_v37, 0.0  ;;  %v2155_v30 = vmul.bf16 %v4057_v15, %v3794_v23 }
 0x585   :  { %vm2029_vm11 = vcmp.ge.f32.partialorder %v3029_v1, 0.0  ;;  %v2037_v12 = vmul.f32 %v3029_v1, %v3587_v48  ;;  %v2043_v7 = vsel %vm2027_vm9, %v3027_v21, %v2035_v36 }
 0x586   :  { %vm2030_vm12 = vcmp.ge.f32.partialorder %v3030_v61, 0.0  ;;  %v2038_v11 = vmul.f32 %v3030_v61, %v3587_v48  ;;  %2169 = vrot.lane.b32.xlu0 %v2118_v5, %s3274_s1  ;;  %v2044_v41 = vsel %vm2028_vm10, %v3028_v37, %v2036_v28 }
 0x587   :  { %v2045_v13 = vsel %vm2029_vm11, %v3029_v1, %v2037_v12  ;;  %2229 = vrot.lane.b32.xlu1 %v2154_v32, %s3275_s18 }
 0x588   :  { %v4073_v17 = vpack.c.bf16 %v2045_v13, %v2043_v7  ;;  %v2046_v19 = vsel %vm2030_vm12, %v3030_v61, %v2038_v11 }
 0x589   :  { %v4075_v43 = vpack.c.bf16 %v2046_v19, %v2044_v41 }
 0x58a   :  { %v2122_v29 = vmul.bf16 %v4073_v17, %v3739_v60  ;;  %v2158_v9 = vmul.bf16 %v4073_v17, %v3787_v20  ;;  %v4127_v60 = vld [vmem:[%s4361_s7 + $0x10] sm:$0xff] }
 0x58b   :  { %2171 = vrot.lane.b32.xlu1 %v2119_v25, %s3274_s1  ;;  %2207 = vrot.lane.b32.xlu0 %v4075_v43, %s3273_s23  ;;  %v2123_v48 = vmul.bf16 %v4075_v43, %v3735_v59  ;;  %v2159_v59 = vmul.bf16 %v4075_v43, %v3794_v23  ;;  %v3138_v20 = vld [vmem:[#allocation8 + $0x4] ss:$12 sps:$4 sm:$0xff]   ;;  %v2426_v23 = vld [vmem:[%s4358_s4 + $0x8] sm:$0xff] }
 0x58c   :  { %2973 = vmatprep.mubr.msk.f32.mxu1 %vm1304_vm14, %v4127_v60 }
 0x58f   :  { %2177 = vrot.lane.b32.xlu0 %v2123_v48, %s3274_s1  ;;  %2205 = vrot.lane.b32.xlu1 %v4073_v17, %s3273_s23 }
 0x593   :  { %2231 = vrot.lane.b32.xlu0 %v2155_v30, %s3275_s18  ;;  %2175 = vrot.lane.b32.xlu1 %v2122_v29, %s3274_s1 }
 0x597   :  { %2235 = vrot.lane.b32.xlu0 %v2158_v9, %s3275_s18  ;;  %2227 = vrot.lane.b32.xlu1 %v3877_v44, %s3275_s18 }
 0x59b   :  { %2233 = vrot.lane.b32.xlu0 %v3877_v44, %s3275_s18  ;;  %2253 = vrot.lane.b32.xlu1 %v2118_v5, %s3276_s3  ;;  %v2425_v44 = vld [vmem:[%s4358_s4] sm:$0xff] }
 0x59f   :  { %2255 = vrot.lane.b32.xlu0 %v2119_v25, %s3276_s3  ;;  %2251 = vrot.lane.b32.xlu1 %v3759_v2, %s3276_s3 }
 0x5a3   :  { %2259 = vrot.lane.b32.xlu0 %v2122_v29, %s3276_s3  ;;  %2237 = vrot.lane.b32.xlu1 %v2159_v59, %s3275_s18 }
 0x5a7   :  { %2257 = vrot.lane.b32.xlu0 %v3759_v2, %s3276_s3  ;;  %2283 = vrot.lane.b32.xlu1 %v2155_v30, %s3277_s24  ;;  %v4134_v2 = vld [vmem:[%s4361_s7 + $0x18] sm:$0xff] }
 0x5a8   :  { %2974 = vmatmul.mubr.msk.f32.gmra.mrb[10].mxu1 %vm1304_vm14, %v4134_v2 }
 0x5a9   :  { %2517 = vmatprep.mubr.bf16.mxu1 %v3138_v20 }
 0x5ab   :  { %2285 = vrot.lane.b32.xlu0 %v3903_v63, %s3277_s24  ;;  %2261 = vrot.lane.b32.xlu1 %v2123_v48, %s3276_s3 }
 0x5af   :  { %2287 = vrot.lane.b32.xlu0 %v2158_v9, %s3277_s24  ;;  %2281 = vrot.lane.b32.xlu1 %v2154_v32, %s3277_s24 }
 0x5b3   :  { %2311 = vrot.lane.b32.xlu0 %v3912_v8, %s3278_s25  ;;  %2291 = vrot.lane.b32.xlu1 %v3903_v63, %s3277_s24 }
 0x5b7   :  { %2289 = vrot.lane.b32.xlu0 %v2159_v59, %s3277_s24  ;;  %2309 = vrot.lane.b32.xlu1 %v2119_v25, %s3278_s25 }
 0x5bb   :  { %2313 = vrot.lane.b32.xlu0 %v2122_v29, %s3278_s25  ;;  %2307 = vrot.lane.b32.xlu1 %v2118_v5, %s3278_s25 }
 0x5bf   :  { %2315 = vrot.lane.b32.xlu0 %v2123_v48, %s3278_s25  ;;  %2317 = vrot.lane.b32.xlu1 %v3912_v8, %s3278_s25  ;;  %v2428_v8 = vld [vmem:[%s4358_s4 + $0x18] sm:$0xff] }
 0x5c3   :  { %2337 = vrot.lane.b32.xlu0 %v3272_v3, %s3279_s26  ;;  %2335 = vrot.lane.b32.xlu1 %v4057_v15, %s3279_s26 }
 0x5c7   :  { %2341 = vrot.lane.b32.xlu0 %v4075_v43, %s3279_s26  ;;  %2333 = vrot.lane.b32.xlu1 %v4053_v40, %s3279_s26 }
 0x5cb   :  { %2339 = vrot.lane.b32.xlu0 %v4073_v17, %s3279_s26  ;;  %2343 = vrot.lane.b32.xlu1 %v3272_v3, %s3279_s26 }
 0x5cf   :  { %2361 = vrot.lane.b32.xlu0 %v3903_v63, %s3280_s27  ;;  %2359 = vrot.lane.b32.xlu1 %v2155_v30, %s3280_s27 }
 0x5d3   :  { %2365 = vrot.lane.b32.xlu0 %v2159_v59, %s3280_s27  ;;  %2357 = vrot.lane.b32.xlu1 %v2154_v32, %s3280_s27 }
 0x5d7   :  { %2363 = vrot.lane.b32.xlu0 %v2158_v9, %s3280_s27  ;;  %2367 = vrot.lane.b32.xlu1 %v3903_v63, %s3280_s27  ;;  %v2168_v63 = vpop.permute.xlu0 %2167 }
 0x5db   :  { %2436 = vperm.xlu0 %3096, %v2426_v23   ;;  %2431 = vperm.xlu1 %3095, %v2425_v44   ;;  %v3109_v47 = vpop.permute.xlu0 %3108 }
 0x5dc   :  { %v3110_v34 = vunpack.i.l.bf16 %v3109_v47  ;;  %v3111_v28 = vunpack.i.h.bf16 %v3109_v47 }
 0x5df   :  { %2446 = vperm.xlu0 %3096, %v2428_v8   ;;  %2441 = vperm.xlu1 %3095, %v2427_v46  }
 0x5f4   :  { %v2200_v39 = vpop.permute.xlu0 %2199 }
 0x5f5   :  { %v2202_v45 = vpop.permute.xlu1 %2201  ;;  %v2209_v1 = vsel %vm245_vm1, %v3110_v34, %v2200_v39 }
 0x5f6   :  { %v2210_v37 = vsel %vm245_vm1, %v2200_v39, %v2202_v45 }
 0x5f8   :  { %v2170_v54 = vpop.permute.xlu0 %2169 }
 0x5f9   :  { %v2230_v51 = vpop.permute.xlu1 %2229  ;;  %v2179_v62 = vsel %vm214_vm0, %v2168_v63, %v2170_v54 }
 0x5fd   :  { %v2208_v53 = vpop.permute.xlu0 %2207  ;;  %v2172_v56 = vpop.permute.xlu1 %2171 }
 0x5fe   :  { %v2180_v16 = vsel %vm214_vm0, %v2170_v54, %v2172_v56 }
 0x5ff   :  { %2485 = vmatprep.subr.bf16.mxu1 %v2180_v16 }
 0x600   :  { %2486 = vmatpush1.bf16.msra.mxu1 %v2179_v62 }
 0x601   :  { %v2178_v0 = vpop.permute.xlu0 %2177  ;;  %v2206_v14 = vpop.permute.xlu1 %2205 }
 0x602   :  { %v2212_v24 = vsel %vm245_vm1, %v2206_v14, %v2208_v53  ;;  %v2211_v12 = vsel %vm245_vm1, %v3111_v28, %v2206_v14  ;;  %v3136_v28 = vld [vmem:[#allocation8] ss:$12 sps:$4 sm:$0xff]  }
 0x605   :  { %v2232_v18 = vpop.permute.xlu0 %2231  ;;  %v2176_v10 = vpop.permute.xlu1 %2175 }
 0x606   :  { %v2181_v21 = vsel %vm214_vm0, %v2174_v49, %v2176_v10  ;;  %v2182_v26 = vsel %vm214_vm0, %v2176_v10, %v2178_v0  ;;  %v2240_v32 = vsel %vm276_vm2, %v2230_v51, %v2232_v18 }
 0x607   :  { %2487 = vmatprep.subr.bf16.mxu1 %v2182_v26 }
 0x608   :  { %2488 = vmatpush1.bf16.msra.mxu1 %v2181_v21 }
 0x609   :  { %v2236_v38 = vpop.permute.xlu0 %2235  ;;  %2489 = vmatprep.subr.bf16.mxu1 %v2210_v37  ;;  %v2228_v36 = vpop.permute.xlu1 %2227 }
 0x60a   :  { %v2239_v13 = vsel %vm276_vm2, %v2228_v36, %v2230_v51 }
 0x60c   :  { %2490 = vmatpush1.bf16.msra.mxu1 %v2209_v1 }
 0x60d   :  { %v2234_v61 = vpop.permute.xlu0 %2233  ;;  %2491 = vmatprep.subr.bf16.mxu1 %v2212_v24  ;;  %v2254_v5 = vpop.permute.xlu1 %2253 }
 0x60e   :  { %v2241_v48 = vsel %vm276_vm2, %v2234_v61, %v2236_v38  ;;  %v3139_v61 = vld [vmem:[#allocation8 + $0x1c] ss:$12 sps:$4 sm:$0xff]  }
 0x610   :  { %2492 = vmatpush1.bf16.msra.mxu1 %v2211_v12 }
 0x611   :  { %v2256_v11 = vpop.permute.xlu0 %2255  ;;  %2493 = vmatprep.subr.bf16.mxu1 %v2240_v32  ;;  %v2252_v7 = vpop.permute.xlu1 %2251 }
 0x612   :  { %v2264_v30 = vsel %vm301_vm3, %v2254_v5, %v2256_v11  ;;  %v2263_v59 = vsel %vm301_vm3, %v2252_v7, %v2254_v5 }
 0x614   :  { %2494 = vmatpush1.bf16.msra.mxu1 %v2239_v13 }
 0x615   :  { %v2260_v41 = vpop.permute.xlu0 %2259  ;;  %v2238_v19 = vpop.permute.xlu1 %2237 }
 0x616   :  { %v2242_v25 = vsel %vm276_vm2, %v2236_v38, %v2238_v19 }
 0x617   :  { %2495 = vmatprep.subr.bf16.mxu1 %v2242_v25 }
 0x618   :  { %2496 = vmatpush1.bf16.msra.mxu1 %v2241_v48 }
 0x619   :  { %v2258_v29 = vpop.permute.xlu0 %2257  ;;  %2497 = vmatprep.subr.bf16.mxu1 %v2264_v30  ;;  %v2284_v9 = vpop.permute.xlu1 %2283 }
 0x61a   :  { %v2265_v8 = vsel %vm301_vm3, %v2258_v29, %v2260_v41  ;;  %v3142_v29 = vld [vmem:[#allocation8 + $0x8] ss:$12 sps:$4 sm:$0xff]  }
 0x61c   :  { %2498 = vmatpush1.bf16.msra.mxu1 %v2263_v59 }
 0x61d   :  { %v2286_v20 = vpop.permute.xlu0 %2285  ;;  %v2262_v23 = vpop.permute.xlu1 %2261 }
 0x61e   :  { %v2266_v44 = vsel %vm301_vm3, %v2260_v41, %v2262_v23  ;;  %v2294_v39 = vsel %vm332_vm4, %v2284_v9, %v2286_v20  ;;  %v3141_v41 = vld [vmem:[#allocation8 + $0x18] ss:$12 sps:$4 sm:$0xff]   ;;  %v3143_v20 = vld [vmem:[#allocation8 + $0x20] ss:$12 sps:$4 sm:$0xff]  }
 0x61f   :  { %2499 = vmatprep.subr.bf16.mxu1 %v2266_v44 }
 0x620   :  { %2500 = vmatpush1.bf16.msra.mxu1 %v2265_v8  ;;  %v4218_v8 = vld [vmem:[%s4362_s8 + $0x8] sm:$0xff] }
 0x621   :  { %v2288_v46 = vpop.permute.xlu0 %2287  ;;  %2501 = vmatprep.subr.bf16.mxu1 %v4057_v15  ;;  %v2282_v63 = vpop.permute.xlu1 %2281 }
 0x622   :  { %v2293_v51 = vsel %vm332_vm4, %v2282_v63, %v2284_v9  ;;  %v2972_v9 = vpop.f32.mrb[8].mxu1  ;;  %v4229_v63 = vld [vmem:[%s4362_s8 + $0x10] sm:$0xff] }
 0x623   :  { %v1383_v59 = vpop.f32.mrb[9].mxu1 }
 0x624   :  { %2502 = vmatpush1.bf16.msra.mxu1 %v4053_v40 }
 0x625   :  { %v2312_v47 = vpop.permute.xlu0 %2311  ;;  %2503 = vmatprep.subr.bf16.mxu1 %v4075_v43  ;;  %v2292_v49 = vpop.permute.xlu1 %2291 }
 0x628   :  { %2504 = vmatpush1.bf16.msra.mxu1 %v4073_v17 }
 0x629   :  { %v2290_v45 = vpop.permute.xlu0 %2289  ;;  %2505 = vmatprep.subr.bf16.mxu1 %v2294_v39  ;;  %v2310_v54 = vpop.permute.xlu1 %2309 }
 0x62a   :  { %v2296_v53 = vsel %vm332_vm4, %v2290_v45, %v2292_v49  ;;  %v2295_v40 = vsel %vm332_vm4, %v2288_v46, %v2290_v45  ;;  %v2320_v43 = vsel %vm359_vm5, %v2310_v54, %v2312_v47  ;;  %v1389_v46 = vadd.f32 %v2972_v9, %v4218_v8  ;;  %v4235_v45 = vld [vmem:[%s4362_s8 + $0x18] sm:$0xff] }
 0x62c   :  { %2506 = vmatpush1.bf16.msra.mxu1 %v2293_v51  ;;  %v2899_v39 = vmul.f32 -1.442695, %v1389_v46 }
 0x62d   :  { %v2314_v15 = vpop.permute.xlu0 %2313  ;;  %2507 = vmatprep.subr.bf16.mxu1 %v2296_v53  ;;  %v2308_v56 = vpop.permute.xlu1 %2307 }
 0x62e   :  { %v2319_v62 = vsel %vm359_vm5, %v2308_v56, %v2310_v54  ;;  %3144 = vpow2.f32 %v2899_v39 }
 0x630   :  { %2508 = vmatpush1.bf16.msra.mxu1 %v2295_v40 }
 0x631   :  { %v2316_v16 = vpop.permute.xlu0 %2315  ;;  %2509 = vmatprep.subr.bf16.mxu1 %v2320_v43  ;;  %v2318_v17 = vpop.permute.xlu1 %2317 }
 0x632   :  { %v2322_v0 = vsel %vm359_vm5, %v2316_v16, %v2318_v17  ;;  %v2321_v10 = vsel %vm359_vm5, %v2314_v15, %v2316_v16 }
 0x634   :  { %2510 = vmatpush1.bf16.msra.mxu1 %v2319_v62 }
 0x635   :  { %v2338_v14 = vpop.permute.xlu0 %2337  ;;  %2511 = vmatprep.subr.bf16.mxu1 %v2322_v0  ;;  %v2336_v18 = vpop.permute.xlu1 %2335 }
 0x636   :  { %v2346_v21 = vsel %vm386_vm6, %v2336_v18, %v2338_v14 }
 0x638   :  { %2512 = vmatpush1.bf16.msra.mxu1 %v2321_v10 }
 0x639   :  { %v2342_v26 = vpop.permute.xlu0 %2341  ;;  %2513 = vmatprep.subr.bf16.mxu1 %v2346_v21  ;;  %v2334_v34 = vpop.permute.xlu1 %2333 }
 0x63a   :  { %v2345_v37 = vsel %vm386_vm6, %v2334_v34, %v2336_v18 }
 0x63c   :  { %2514 = vmatpush1.bf16.msra.mxu1 %v2345_v37 }
 0x63d   :  { %v2340_v38 = vpop.permute.xlu0 %2339  ;;  %v2344_v36 = vpop.permute.xlu1 %2343 }
 0x63e   :  { %v2347_v1 = vsel %vm386_vm6, %v2340_v38, %v2342_v26  ;;  %v2348_v24 = vsel %vm386_vm6, %v2342_v26, %v2344_v36 }
 0x63f   :  { %2515 = vmatprep.subr.bf16.mxu1 %v2348_v24 }
 0x640   :  { %2516 = vmatpush1.bf16.msra.mxu1 %v2347_v1 }
 0x641   :  { %v2362_v5 = vpop.permute.xlu0 %2361  ;;  %v2360_v12 = vpop.permute.xlu1 %2359 }
 0x642   :  { %v2370_v32 = vsel %vm411_vm7, %v2360_v12, %v2362_v5 }
 0x643   :  { %2518 = vmatmul.mubr.bf16.vlgmr.msra.gmra.mrb[12].mxu1 %v3136_v28  ;;  %2538 = vmatprep.subr.bf16.mxu1 %v2370_v32 }
 0x644   :  { %2527 = vmatprep.mubr.bf16.mxu1 %v3139_v61 }
 0x645   :  { %v2366_v11 = vpop.permute.xlu0 %2365  ;;  %v2358_v7 = vpop.permute.xlu1 %2357 }
 0x646   :  { %v2369_v13 = vsel %vm411_vm7, %v2358_v7, %v2360_v12 }
 0x647   :  { %2539 = vmatpush1.bf16.msra.mxu1 %v2369_v13 }
 0x649   :  { %v2364_v19 = vpop.permute.xlu0 %2363  ;;  %v2368_v25 = vpop.permute.xlu1 %2367 }
 0x64a   :  { %v2371_v48 = vsel %vm411_vm7, %v2364_v19, %v2366_v11  ;;  %v2372_v30 = vsel %vm411_vm7, %v2366_v11, %v2368_v25  ;;  %v3145_v11 = vpop.eup %3144 }
 0x64b   :  { %2528 = vmatmul.mubr.bf16.gmra.mrb[16].mxu1 %v3141_v41  ;;  %2540 = vmatprep.subr.bf16.mxu1 %v2372_v30  ;;  %v1415_v13 = vadd.f32 1.0, %v3145_v11 }
 0x64c   :  { %2541 = vmatpush1.bf16.msra.mxu1 %v2371_v48  ;;  %2570 = vmatprep.mubr.bf16.mxu1 %v3272_v3 }
 0x653   :  { %2926 = vmatmul.mubr.msk.bf16.vlgmr.msra.gmra.mrb[12].mxu1 %vm522_vm8, %v3142_v29 }
 0x654   :  { %2580 = vmatprep.mubr.bf16.mxu1 %v3272_v3  ;;  %v4224_v3 = vld [vmem:[%s4362_s8] sm:$0xff] }
 0x655   :  { %v1384_v47 = vadd.f32 %v1383_v59, %v4224_v3 }
 0x657   :  { %v2898_v17 = vmul.f32 -1.442695, %v1384_v47 }
 0x659   :  { %3146 = vpow2.f32 %v2898_v17 }
 0x65a   :  { %v2437_v15 = vpop.permute.xlu0 %2436 }
 0x65b   :  { %2927 = vmatmul.mubr.msk.bf16.gmra.mrb[16].mxu1 %vm522_vm8, %v3143_v20 }
 0x65c   :  { %2989 = vmatprep.mubr.msk.f32.mxu1 %vm1304_vm14, %v4043_v6  ;;  %v2432_v6 = vpop.permute.xlu1 %2431 }
 0x65e   :  { %v2447_v36 = vpop.permute.xlu0 %2446 }
 0x660   :  { %v2442_v21 = vpop.permute.xlu1 %2441 }
 0x663   :  { %v3147_v7 = vpop.eup %3146 }
 0x664   :  { %v1414_v19 = vadd.f32 1.0, %v3147_v7 }
 0x67b   :  { %v2975_v23 = vpop.f32.mrb[10].mxu1 }
 0x67c   :  { %v1393_v44 = vpop.f32.mrb[11].mxu1  ;;  %v1399_v62 = vadd.f32 %v2975_v23, %v4235_v45 }
 0x67d   :  { %v1394_v54 = vadd.f32 %v1393_v44, %v4229_v63 }
 0x67e   :  { %v2901_v26 = vmul.f32 -1.442695, %v1399_v62 }
 0x67f   :  { %v2900_v18 = vmul.f32 -1.442695, %v1394_v54 }
 0x681   :  { %3148 = vpow2.f32 %v2900_v18 }
 0x682   :  { %3150 = vpow2.f32 %v2901_v26 }
 0x683   :  { %3152 = vrcp.f32 %v1415_v13  ;;  %v3186_v13 = vld [vmem:[%s4354_s0 + $0x38] sm:$0xff] }
 0x684   :  { %3154 = vrcp.f32 %v1414_v19 }
 0x68b   :  { %v3149_v41 = vpop.eup %3148 }
 0x68c   :  { %v3151_v25 = vpop.eup %3150  ;;  %v1416_v48 = vadd.f32 1.0, %v3149_v41 }
 0x68d   :  { %v1417_v30 = vadd.f32 1.0, %v3151_v25  ;;  %v3153_v29 = vpop.eup %3152 }
 0x68e   :  { %3156 = vrcp.f32 %v1416_v48  ;;  %v3155_v9 = vpop.eup %3154 }
 0x68f   :  { %3158 = vrcp.f32 %v1417_v30 }
 0x698   :  { %v3157_v59 = vpop.eup %3156 }
 0x699   :  { %v3159_v20 = vpop.eup %3158 }
 0x726   :  { %v2572_v49 = vpop.f32.mrb[12].mxu1 }
 0x727   :  { %v4238_v51 = vadd.f32 %v2572_v49, %v2432_v6  ;;  %v2574_v53 = vpop.f32.mrb[13].mxu1 }
 0x728   :  { %v4240_v56 = vadd.f32 %v2574_v53, %v2432_v6  ;;  %v2576_v40 = vpop.f32.mrb[14].mxu1 }
 0x729   :  { %v4242_v43 = vadd.f32 %v2576_v40, %v2437_v15  ;;  %v2578_v16 = vpop.f32.mrb[15].mxu1 }
 0x72a   :  { %v2591_v0 = vadd.f32 %v4240_v56, %v4238_v51  ;;  %v4247_v14 = vadd.f32 %v2578_v16, %v2437_v15 }
 0x72c   :  { %v2594_v10 = vadd.f32 %v4247_v14, %v4242_v43  ;;  %2592 = vadd.xlane.f32.xlu1 %v2591_v0  ;;  %v3179_v0 = vld [vmem:[%s4354_s0 + $0x10] sm:$0xff] }
 0x72e   :  { %v2582_v34 = vpop.f32.mrb[16].mxu1  ;;  %2595 = vadd.xlane.f32.xlu0 %v2594_v10 }
 0x72f   :  { %v4251_v37 = vadd.f32 %v2582_v34, %v2442_v21  ;;  %v2584_v38 = vpop.f32.mrb[17].mxu1 }
 0x730   :  { %v4253_v1 = vadd.f32 %v2584_v38, %v2442_v21  ;;  %v2586_v24 = vpop.f32.mrb[18].mxu1  ;;  %v3182_v38 = vld [vmem:[%s4354_s0 + $0x8] sm:$0xff] }
 0x731   :  { %v4255_v28 = vadd.f32 %v2586_v24, %v2447_v36  ;;  %v2588_v61 = vpop.f32.mrb[19].mxu1 }
 0x732   :  { %v2597_v5 = vadd.f32 %v4253_v1, %v4251_v37  ;;  %v4259_v12 = vadd.f32 %v2588_v61, %v2447_v36 }
 0x734   :  { %v2600_v32 = vadd.f32 %v4259_v12, %v4255_v28  ;;  %2598 = vadd.xlane.f32.xlu0 %v2597_v5  ;;  %v3184_v5 = vld [vmem:[%s4354_s0 + $0x28] sm:$0xff] }
 0x736   :  { %2601 = vadd.xlane.f32.xlu1 %v2600_v32 }
 0x747   :  { %1433 = vperm.xlu1 %3095, %v3153_v29  }
 0x74a   :  { %1428 = vperm.xlu0 %3096, %v3155_v9  }
 0x74b   :  { %1438 = vperm.xlu1 %3095, %v3157_v59  }
 0x74e   :  { %1443 = vperm.xlu0 %3096, %v3159_v20  }
 0x7b9   :  { %v2593_v23 = vpop.xlane.xlu1 %2592 }
 0x7ba   :  { %v2603_v46 = vmul.f32 0.00390625, %v2593_v23 }
 0x7bb   :  { %v2596_v44 = vpop.xlane.xlu0 %2595 }
 0x7bc   :  { %v2604_v6 = vmul.f32 0.00390625, %v2596_v44 }
 0x7be   :  { %v3002_v47 = vpack.c.bf16 %v2604_v6, %v2603_v46 }
 0x7c0   :  { %3003 = vmatpush3.bf16.msra.mxu0 %v3002_v47 }
 0x7c1   :  { %v2599_v49 = vpop.xlane.xlu0 %2598  ;;  %3004 = vmatprep.subr.bf16.mxu0 %v3281_v42  ;;  %v3180_v42 = vld [vmem:[%s4354_s0 + $0x18] sm:$0xff] }
 0x7c2   :  { %v2605_v54 = vmul.f32 0.00390625, %v2599_v49 }
 0x7c3   :  { %v2602_v39 = vpop.xlane.xlu1 %2601 }
 0x7c4   :  { %v2606_v53 = vmul.f32 0.00390625, %v2602_v39 }
 0x7c6   :  { %v3005_v15 = vpack.c.bf16 %v2606_v53, %v2605_v54 }
 0x7c7   :  { %v1434_v40 = vpop.permute.xlu1 %1433 }
 0x7c8   :  { %v1448_v16 = vmul.f32 %v3854_v35, %v1434_v40  ;;  %v1449_v17 = vmul.f32 %v3858_v4, %v1434_v40  ;;  %3006 = vmatpush3.bf16.msra.mxu0 %v3005_v15  ;;  %v3181_v4 = vld [vmem:[%s4354_s0] sm:$0xff] }
 0x7c9   :  { %v1429_v62 = vpop.permute.xlu0 %1428 }
 0x7ca   :  { %v1456_v18 = vadd.f32 %v3179_v0, %v1448_v16  ;;  %v1457_v10 = vadd.f32 %v3180_v42, %v1449_v17  ;;  %v1446_v21 = vmul.f32 %v3850_v22, %v1429_v62  ;;  %v1447_v26 = vmul.f32 %v3852_v33, %v1429_v62  ;;  %v3187_v42 = vld [vmem:[%s4354_s0 + $0x50] sm:$0xff] }
 0x7cb   :  { %2985 = vmatmul.mubr.msk.f32.vlgmr.msra.gmra.mrb[10].mxu0 %vm522_vm8, %v3981_v52  ;;  %v1439_v35 = vpop.permute.xlu1 %1438  ;;  %v3183_v52 = vld [vmem:[%s4354_s0 + $0x20] sm:$0xff] }
 0x7cc   :  { %1464 = vst [vmem:[#allocation10 + $0x10] sm:$0xff] %v1456_v18  ;;  %1465 = vst [vmem:[#allocation10 + $0x18] sm:$0xff] %v1457_v10  ;;  %v1454_v34 = vadd.f32 %v3181_v4, %v1446_v21  ;;  %v1455_v36 = vadd.f32 %v3182_v38, %v1447_v26  ;;  %v1450_v22 = vmul.f32 %v3862_v27, %v1439_v35  ;;  %v3185_v27 = vld [vmem:[%s4354_s0 + $0x30] sm:$0xff]  ;;  %v3188_v21 = vld [vmem:[%s4354_s0 + $0x58] sm:$0xff] }
 0x7cd   :  { %v1451_v33 = vmul.f32 %v3864_v31, %v1439_v35  ;;  %v1444_v24 = vpop.permute.xlu0 %1443 }
 0x7ce   :  { %1462 = vst [vmem:[#allocation10] sm:$0xff] %v1454_v34  ;;  %1463 = vst [vmem:[#allocation10 + $0x8] sm:$0xff] %v1455_v36  ;;  %v1458_v61 = vadd.f32 %v3183_v52, %v1450_v22  ;;  %v1452_v11 = vmul.f32 %v3892_v55, %v1444_v24  ;;  %v1453_v7 = vmul.f32 %v3894_v58, %v1444_v24 }
 0x7cf   :  { %v1459_v32 = vadd.f32 %v3184_v5, %v1451_v33  ;;  %v3191_v33 = vld [vmem:[%s4354_s0 + $0x70] sm:$0xff] }
 0x7d0   :  { %1466 = vst [vmem:[#allocation10 + $0x20] sm:$0xff] %v1458_v61  ;;  %v1460_v31 = vadd.f32 %v3185_v27, %v1452_v11  ;;  %v1461_v41 = vadd.f32 %v3186_v13, %v1453_v7 }
 0x7d1   :  { %1467 = vst [vmem:[#allocation10 + $0x28] sm:$0xff] %v1459_v32 }
 0x7d2   :  { %1468 = vst [vmem:[#allocation10 + $0x30] sm:$0xff] %v1460_v31  ;;  %1469 = vst [vmem:[#allocation10 + $0x38] sm:$0xff] %v1461_v41 }
 0x89e   :  { %v2678_v19 = vpop.f32.mrb[10].mxu0 }
 0x89f   :  { %v2679_v25 = vadd.f32 %v2678_v19, %v4034_v57  ;;  %v2986_v55 = vpop.f32.mrb[11].mxu0 }
 0x8a1   :  { %v2682_v48 = vmax.f32 %v2679_v25, 0.0 }
 0x8a3   :  { %2987 = vmatprep.subr.mxu1 %v2682_v48 }
 0x8a4   :  { %2988 = vmatpush3.msra.mxu1 %v2682_v48 }
 0x8a5   :  { %2990 = vmatmul.mubr.msk.f32.vlgmr.msra.gmra.mrb[20].mxu1 %vm1304_vm14, %v4051_v50 }
 0x8a6   :  { %2992 = vmatprep.mubr.msk.f32.mxu1 %vm1304_vm14, %v4127_v60 }
 0x8a9   :  { %2993 = vmatmul.mubr.msk.f32.gmra.mrb[22].mxu1 %vm1304_vm14, %v4134_v2 }
 0x978   :  { %v2991_v58 = vpop.f32.mrb[20].mxu1 }
 0x979   :  { %v2775_v30 = vadd.f32 %v2991_v58, %v4218_v8  ;;  %v2769_v29 = vpop.f32.mrb[21].mxu1 }
 0x97a   :  { %v2770_v9 = vadd.f32 %v2769_v29, %v4224_v3 }
 0x97b   :  { %v2934_v57 = vmul.f32 -1.442695, %v2775_v30 }
 0x97c   :  { %v2933_v59 = vmul.f32 -1.442695, %v2770_v9  ;;  %v2994_v20 = vpop.f32.mrb[22].mxu1 }
 0x97d   :  { %3160 = vpow2.f32 %v2934_v57  ;;  %v2785_v23 = vadd.f32 %v2994_v20, %v4235_v45  ;;  %v2779_v44 = vpop.f32.mrb[23].mxu1 }
 0x97e   :  { %3162 = vpow2.f32 %v2933_v59  ;;  %v2780_v50 = vadd.f32 %v2779_v44, %v4229_v63 }
 0x97f   :  { %v2936_v60 = vmul.f32 -1.442695, %v2785_v23 }
 0x980   :  { %v2935_v46 = vmul.f32 -1.442695, %v2780_v50 }
 0x981   :  { %3164 = vpow2.f32 %v2936_v60 }
 0x982   :  { %3166 = vpow2.f32 %v2935_v46 }
 0x987   :  { %v3161_v2 = vpop.eup %3160 }
 0x988   :  { %v3163_v6 = vpop.eup %3162  ;;  %v2801_v8 = vadd.f32 1.0, %v3161_v2 }
 0x989   :  { %v2800_v47 = vadd.f32 1.0, %v3163_v6 }
 0x98a   :  { %3168 = vrcp.f32 %v2801_v8 }
 0x98b   :  { %v3165_v3 = vpop.eup %3164  ;;  %3170 = vrcp.f32 %v2800_v47 }
 0x98c   :  { %v3167_v49 = vpop.eup %3166  ;;  %v2803_v39 = vadd.f32 1.0, %v3165_v3 }
 0x98d   :  { %v2802_v54 = vadd.f32 1.0, %v3167_v49 }
 0x98e   :  { %3172 = vrcp.f32 %v2803_v39 }
 0x98f   :  { %3174 = vrcp.f32 %v2802_v54 }
 0x994   :  { %v3169_v45 = vpop.eup %3168 }
 0x995   :  { %v3171_v53 = vpop.eup %3170  ;;  %2819 = vperm.xlu0 %3096, %v3169_v45  }
 0x996   :  { %2814 = vperm.xlu1 %3095, %v3171_v53  }
 0x998   :  { %v3173_v63 = vpop.eup %3172 }
 0x999   :  { %v3175_v15 = vpop.eup %3174  ;;  %2829 = vperm.xlu0 %3096, %v3173_v63  }
 0x99a   :  { %2824 = vperm.xlu1 %3095, %v3175_v15  }
 0xa14   :  { %v2820_v40 = vpop.permute.xlu0 %2819 }
 0xa15   :  { %v2834_v16 = vmul.f32 %v4242_v43, %v2820_v40  ;;  %v2835_v17 = vmul.f32 %v4247_v14, %v2820_v40  ;;  %v2815_v62 = vpop.permute.xlu1 %2814  ;;  %v3189_v43 = vld [vmem:[%s4354_s0 + $0x40] sm:$0xff] }
 0xa16   :  { %v2832_v0 = vmul.f32 %v4238_v51, %v2815_v62  ;;  %v2833_v18 = vmul.f32 %v4240_v56, %v2815_v62  ;;  %v3190_v51 = vld [vmem:[%s4354_s0 + $0x48] sm:$0xff] }
 0xa17   :  { %v2842_v10 = vadd.f32 %v3187_v42, %v2834_v16  ;;  %v2843_v26 = vadd.f32 %v3188_v21, %v2835_v17 }
 0xa18   :  { %v2840_v14 = vadd.f32 %v3189_v43, %v2832_v0  ;;  %v2841_v56 = vadd.f32 %v3190_v51, %v2833_v18  ;;  %v2830_v35 = vpop.permute.xlu0 %2829 }
 0xa19   :  { %2851 = vst [vmem:[#allocation10 + $0x50] sm:$0xff] %v2842_v10  ;;  %2852 = vst [vmem:[#allocation10 + $0x58] sm:$0xff] %v2843_v26  ;;  %v2838_v4 = vmul.f32 %v4255_v28, %v2830_v35  ;;  %v2839_v34 = vmul.f32 %v4259_v12, %v2830_v35  ;;  %v2825_v38 = vpop.permute.xlu1 %2824  ;;  %v3192_v28 = vld [vmem:[%s4354_s0 + $0x78] sm:$0xff]  ;;  %v3193_v12 = vld [vmem:[%s4354_s0 + $0x60] sm:$0xff] }
 0xa1a   :  { %2849 = vst [vmem:[#allocation10 + $0x40] sm:$0xff] %v2840_v14  ;;  %2850 = vst [vmem:[#allocation10 + $0x48] sm:$0xff] %v2841_v56  ;;  %v2836_v36 = vmul.f32 %v4251_v37, %v2825_v38  ;;  %v2837_v22 = vmul.f32 %v4253_v1, %v2825_v38  ;;  %v3194_v37 = vld [vmem:[%s4354_s0 + $0x68] sm:$0xff] }
 0xa1b   :  { %v2846_v24 = vadd.f32 %v3191_v33, %v2838_v4  ;;  %v2847_v52 = vadd.f32 %v3192_v28, %v2839_v34 }
 0xa1c   :  { %v2844_v61 = vadd.f32 %v3193_v12, %v2836_v36  ;;  %v2845_v1 = vadd.f32 %v3194_v37, %v2837_v22 }
 0xa1d   :  { %2855 = vst [vmem:[#allocation10 + $0x70] sm:$0xff] %v2846_v24  ;;  %2856 = vst [vmem:[#allocation10 + $0x78] sm:$0xff] %v2847_v52 }
 0xa1e   :  { %2853 = vst [vmem:[#allocation10 + $0x60] sm:$0xff] %v2844_v61  ;;  %2854 = vst [vmem:[#allocation10 + $0x68] sm:$0xff] %v2845_v1 }
 0xa1f   :  { %3250 = shalt.err (!%p3247_p6)
}
 0xa20   :  { %s3251_s18 = scalar_lea.hbm %s4365_s11, 2048 }
 0xa21   :  { %p3252_p7 = scmp.ne.s32.totalorder %s4365_s11, %s3251_s18  ;;  %p3255_p8 = scmp.lt.u32.totalorder %s3251_s18, %s4365_s11 }
 0xa23   :  { %p3257_p9 = pnand %p3255_p8, %p3252_p7 }
 0xa25   :  { %3260 = shalt.err (!%p3257_p9)
}
 0xa26   :  { %s3285_s24 = smov 256  }
 0xa27   :  { %2868 = dma.vmem_to_hbm [thread:$0]  %s2863_s20, 2048, %s4365_s11, [#allocation7], %s3285_s24, %s3285_s24, %s3273_s23  }
 0xa28   :  { %3265 = dma.done.wait [#allocation7], 2048  }
 0xa29   :  { %3266 = vsyncadd [#allocation7], 4294965248 }
 0xa2a   :  { %2872 = vsyncpa [#allocation6], 1 }
 0xa2b   :  { %2873 = vsyncpa [#allocation9], 1 }
 0xa2c   :  { %2874 = vsyncpa [#allocation7], 1 }

</bundles_post_ra>
